<compile_context>
chip_gen: v7x
topology: tpu7x:2x2x1
jax: 0.10.0
libtpu: 0.0.40
codegen_flags: <defaults>
</compile_context>

<pallas_src>
import functools
import math

import jax
import jax.numpy as jnp
from jax import lax
from jax.experimental import pallas as pl
from jax.experimental.pallas import tpu as pltpu


def _choose_q_tile(n):
    for cand in (512, 256, 128, 64, 32, 16, 8):
        if n % cand == 0:
            return cand
    return n  # ragged N: single tile (see TODO above)


# ---------------------------------------------------------------------------
# Fused kernel: grid = (batch, q_tile). One q-tile of one batch element per step.
# ---------------------------------------------------------------------------
def fused_attention_kernel(x_ref, wqkv_ref, bqkv_ref, wproj_ref, bproj_ref,
                           out_ref, *rest, num_heads, q_tile, with_weights):
    # x_ref:     (1, N, C)   compute dtype (whole sequence of one batch element)
    # wqkv_ref:  (C, 3C)     compute dtype (q columns pre-scaled by head_dim**-0.5)
    # bqkv_ref:  (1, 3C) f32; wproj_ref: (C, C) cdt; bproj_ref: (1, C) f32
    # out_ref:   (1, tq, C)
    # rest:      ([a_ref (1, H, tq, N)],  qkv_scratch (N, 3C),  ctx_scratch (tq, C))
    if with_weights:
        a_ref, qkv_scr, ctx_scr = rest
    else:
        a_ref = None
        qkv_scr, ctx_scr = rest

    qi = pl.program_id(1)
    C = wproj_ref.shape[0]
    hd = C // num_heads
    cdt = qkv_scr.dtype

    # --- once per batch element: QKV projection (single MXU matmul) -> VMEM scratch ---
    @pl.when(qi == 0)
    def _():
        qkv = jnp.dot(x_ref[0], wqkv_ref[...], preferred_element_type=jnp.float32)
        qkv = qkv + bqkv_ref[...].astype(jnp.float32)          # (N, 3C) f32
        qkv_scr[...] = qkv.astype(cdt)                          # single cast

    # Query rows of this tile (softmax scale already folded into W_qkv on the host).
    r0 = pl.multiple_of(qi * q_tile, q_tile)
    q_rows = qkv_scr[pl.ds(r0, q_tile), 0:C]                    # (tq, C) cdt

    # Heads in pairs so ctx stores are 2*hd lanes wide (128 at real AST sizes).
    pair = 2 if (num_heads % 2 == 0 and hd < 128) else 1
    for h0 in range(0, num_heads, pair):
        parts = []
        for h in range(h0, h0 + pair):
            lo = h * hd
            qh = q_rows[:, lo:lo + hd]                          # (tq, hd)
            kh = qkv_scr[:, C + lo:C + lo + hd]                 # (N, hd)
            vh = qkv_scr[:, 2 * C + lo:2 * C + lo + hd]         # (N, hd)

            # q @ k^T contracting last dims directly (no transpose relayout).
            s = lax.dot_general(qh, kh, (((1,), (1,)), ((), ())),
                                preferred_element_type=jnp.float32)  # (tq, N) f32

            # Numerically-stable softmax; f32 elementwise, reciprocal on the EUP slot.
            m = jnp.max(s, axis=-1, keepdims=True)
            p = jnp.exp(s - m)
            p = p * pl.reciprocal(jnp.sum(p, axis=-1, keepdims=True), approx=True)

            if with_weights:
                a_ref[0, h] = p.astype(a_ref.dtype)

            parts.append(jnp.dot(p.astype(cdt), vh,
                                 preferred_element_type=jnp.float32))
        blk = parts[0] if pair == 1 else jnp.concatenate(parts, axis=-1)
        # Column-slice write == (attn @ v).transpose(1, 2).reshape(B, N, C) layout.
        ctx_scr[:, h0 * hd:(h0 + pair) * hd] = blk.astype(cdt)

    # --- output projection for this q-tile ---
    out = jnp.dot(ctx_scr[...], wproj_ref[...], preferred_element_type=jnp.float32)
    out_ref[0] = (out + bproj_ref[...].astype(jnp.float32)).astype(out_ref.dtype)


# ---------------------------------------------------------------------------
# Wrapper
# ---------------------------------------------------------------------------
def attention_forward(x, params, num_heads, *, return_attn_weights=False,
                      compute_dtype=jnp.bfloat16, attn_weights_dtype=jnp.bfloat16,
                      q_tile=None):
    """Attention.forward: x (B, N, C) -> (out (B, N, C), attn (B, H, N, N) or None).

    The module's `self.attention_weights` side-output is produced only when
    return_attn_weights=True (the hot path skips the O(B*H*N^2) store) and is
    stored in `attn_weights_dtype` (bf16 by default).
    """
    B, N, C = x.shape
    assert C % num_heads == 0
    head_dim = C // num_heads
    scale = head_dim ** (-0.5)
    cdt = jnp.dtype(compute_dtype)

    tq = q_tile if q_tile is not None else _choose_q_tile(N)
    assert N % tq == 0, "q_tile must divide N"
    nq = N // tq

    # Fold the softmax scale into the q columns of the QKV projection (zero kernel cost).
    col_scale = jnp.concatenate([jnp.full((C,), scale, jnp.float32),
                                 jnp.ones((2 * C,), jnp.float32)])
    w_qkv = (params["w_qkv"].astype(jnp.float32) * col_scale[None, :]).astype(cdt)
    b_qkv = (params["b_qkv"].astype(jnp.float32) * col_scale).reshape(1, 3 * C)  # f32
    w_proj = params["w_proj"].astype(cdt)
    b_proj = params["b_proj"].astype(jnp.float32).reshape(1, C)                  # f32
    xw = x.astype(cdt)

    # --- explicit VMEM budget from the actual block/scratch footprint ---
    csz = cdt.itemsize
    osz = jnp.dtype(x.dtype).itemsize
    awsz = jnp.dtype(attn_weights_dtype).itemsize
    vmem_est = ((C * 3 * C + C * C) * csz + 4 * C * 4      # resident weights + f32 biases
                + 2 * N * C * csz                          # x block (double-buffered)
                + 2 * tq * C * osz                         # out block (double-buffered)
                + N * 3 * C * csz                          # qkv scratch
                + tq * C * csz                             # ctx scratch
                + 4 * tq * N * 4)                          # live f32 score/softmax temps
    if return_attn_weights:
        vmem_est += 2 * num_heads * tq * N * awsz
    vmem_limit = int(min(max(2 * vmem_est, 32 << 20), 100 << 20))

    cost = pl.CostEstimate(
        flops=B * (2 * N * C * 3 * C + 4 * N * N * C + 2 * N * C * C),
        transcendentals=B * num_heads * N * N,
        bytes_accessed=(B * N * C * (csz + osz) + (3 * C * C + C * C) * csz + 4 * C * 4
                        + (B * num_heads * N * N * awsz if return_attn_weights else 0)))

    kern = functools.partial(fused_attention_kernel, num_heads=num_heads,
                             q_tile=tq, with_weights=return_attn_weights)

    out_shape = jax.ShapeDtypeStruct((B, N, C), x.dtype)
    out_specs = pl.BlockSpec((1, tq, C), lambda b, qi: (b, qi, 0))
    if return_attn_weights:
        out_shape = (out_shape,
                     jax.ShapeDtypeStruct((B, num_heads, N, N), attn_weights_dtype))
        out_specs = (out_specs,
                     pl.BlockSpec((1, num_heads, tq, N), lambda b, qi: (b, 0, qi, 0)))

    def _run(single_buffer_weights):
        resident = dict(pipeline_mode=pl.Buffered(1)) if single_buffer_weights else {}
        in_specs = [
            pl.BlockSpec((1, N, C), lambda b, qi: (b, 0, 0)),            # x (per batch)
            pl.BlockSpec((C, 3 * C), lambda b, qi: (0, 0), **resident),  # W_qkv resident
            pl.BlockSpec((1, 3 * C), lambda b, qi: (0, 0), **resident),  # b_qkv resident
            pl.BlockSpec((C, C), lambda b, qi: (0, 0), **resident),      # W_proj resident
            pl.BlockSpec((1, C), lambda b, qi: (0, 0), **resident),      # b_proj resident
        ]
        return pl.pallas_call(
            kern,
            out_shape=out_shape,
            grid_spec=pltpu.PrefetchScalarGridSpec(
                num_scalar_prefetch=0,
                grid=(B, nq),
                in_specs=in_specs,
                out_specs=out_specs,
                scratch_shapes=[
                    pltpu.VMEM((N, 3 * C), cdt),   # full qkv activation (per batch elem)
                    pltpu.VMEM((tq, C), cdt),      # merged-head context for this q-tile
                ],
            ),
            compiler_params=pltpu.CompilerParams(
                dimension_semantics=("parallel", "arbitrary"),  # batch megacore; q-tiles reuse scratch
                vmem_limit_bytes=vmem_limit),
            cost_estimate=cost,
        )(xw, w_qkv, b_qkv, w_proj, b_proj)

    try:
        res = _run(True)
    except Exception:
        # pl.Buffered(1) not supported by this jax build -> fall back to default buffering.
        res = _run(False)

    if return_attn_weights:
        out, attn = res
        return out, attn
    return res, None


# ---------------------------------------------------------------------------
# Pure-JAX reference (for correctness check)
# ---------------------------------------------------------------------------
def reference_forward(x, params, num_heads):
    B, N, C = x.shape
    hd = C // num_heads
    scale = hd ** (-0.5)
    qkv = x @ params["w_qkv"] + params["b_qkv"]
    qkv = qkv.reshape(B, N, 3, num_heads, hd).transpose(2, 0, 3, 1, 4)
    q, k, v = qkv[0], qkv[1], qkv[2]
    s = jnp.einsum("bhqd,bhkd->bhqk", q, k) * scale
    a = jax.nn.softmax(s, axis=-1)
    ctx = jnp.einsum("bhqk,bhkd->bhqd", a, v)
    ctx = ctx.transpose(0, 2, 1, 3).reshape(B, N, C)
    return ctx @ params["w_proj"] + params["b_proj"], a


# ---------------------------------------------------------------------------
# Main
# ---------------------------------------------------------------------------
if __name__ == "__main__":
    # Small shapes consistent with the module (dim % num_heads == 0).
    B, N, C = 2, 16, 32
    num_heads = 4

    key = jax.random.PRNGKey(0)
    kx, kq, kbq, kp, kbp = jax.random.split(key, 5)

    x = jax.random.normal(kx, (B, N, C), dtype=jnp.float32)

    # Parameters stored as (in, out) so the kernel computes x @ W + b
    # (equivalent to PyTorch's x @ W.T + b for nn.Linear).
    bound = 1.0 / math.sqrt(C)
    params = {
        "w_qkv": jax.random.uniform(kq, (C, 3 * C), jnp.float32, -bound, bound),
        "b_qkv": jax.random.uniform(kbq, (3 * C,), jnp.float32, -bound, bound),
        "w_proj": jax.random.uniform(kp, (C, C), jnp.float32, -bound, bound),
        "b_proj": jax.random.uniform(kbp, (C,), jnp.float32, -bound, bound),
    }

    ref_out, ref_attn = reference_forward(x, params, num_heads)

    # (1) f32 compute + attention weights + explicit q-tiling (2 q-tiles): tight check.
    out, attn = attention_forward(x, params, num_heads,
                                  return_attn_weights=True,
                                  compute_dtype=jnp.float32,
                                  attn_weights_dtype=jnp.float32,
                                  q_tile=8)
    out = jax.block_until_ready(out)
    attn = jax.block_until_ready(attn)
    assert out.shape == (B, N, C)
    assert attn.shape == (B, num_heads, N, N)
    # approx-reciprocal softmax -> slightly relaxed tolerance vs exact reference.
    assert jnp.allclose(out, ref_out, atol=2e-3, rtol=2e-3), "f32 output mismatch"
    assert jnp.allclose(attn, ref_attn, atol=2e-3, rtol=2e-3), "f32 attn-weights mismatch"

    # (2) default hot path: bf16 MXU operands, no attention-weights output.
    out_fast, attn_fast = attention_forward(x, params, num_heads)
    out_fast = jax.block_until_ready(out_fast)
    assert attn_fast is None
    assert out_fast.shape == (B, N, C)
    assert jnp.allclose(out_fast.astype(jnp.float32), ref_out, atol=5e-2, rtol=5e-2), \
        "bf16 hot-path output mismatch"

    print("KERNEL_OK")
</pallas_src>

<mosaic_0001>
module attributes {stable_mosaic.version = 11 : i64} {
  func.func @fused_attention_kernel(%arg0: i32, %arg1: i32, %arg2: memref<1x16x32xf32, #tpu.memory_space<vmem>>, %arg3: memref<32x96xf32, #tpu.memory_space<vmem>>, %arg4: memref<1x96xf32, #tpu.memory_space<vmem>>, %arg5: memref<32x32xf32, #tpu.memory_space<vmem>>, %arg6: memref<1x32xf32, #tpu.memory_space<vmem>>, %arg7: memref<1x8x32xf32, #tpu.memory_space<vmem>>, %arg8: memref<1x4x8x16xf32, #tpu.memory_space<vmem>>, %arg9: memref<16x96xf32, #tpu.memory_space<vmem>>, %arg10: memref<8x32xf32, #tpu.memory_space<vmem>>) attributes {dimension_semantics = [#tpu.dimension_semantics<parallel>, #tpu.dimension_semantics<arbitrary>], iteration_bounds = array<i64: 2, 2>, scalar_prefetch = 0 : i64, scratch_operands = 2 : i64, tpu.core_type = #tpu.core_type<tc>, window_params = [{transform_indices = @transform_0, window_bounds = array<i64: 1, 16, 32>}, {pipeline_mode = #tpu.pipeline_mode<synchronous>, transform_indices = @transform_1, window_bounds = array<i64: 32, 96>}, {pipeline_mode = #tpu.pipeline_mode<synchronous>, transform_indices = @transform_2, window_bounds = array<i64: 1, 96>}, {pipeline_mode = #tpu.pipeline_mode<synchronous>, transform_indices = @transform_3, window_bounds = array<i64: 32, 32>}, {pipeline_mode = #tpu.pipeline_mode<synchronous>, transform_indices = @transform_4, window_bounds = array<i64: 1, 32>}, {transform_indices = @transform_5, window_bounds = array<i64: 1, 8, 32>}, {transform_indices = @transform_6, window_bounds = array<i64: 1, 4, 8, 16>}]} {
    %c0_i32 = arith.constant 0 : i32
    %0 = arith.cmpi eq, %arg1, %c0_i32 : i32
    %1 = arith.extui %0 : i1 to i32
    %c0_i32_0 = arith.constant 0 : i32
    %2 = arith.cmpi ne, %1, %c0_i32_0 : i32
    scf.if %2 {
      %c0_50 = arith.constant 0 : index
      %c0_51 = arith.constant 0 : index
      %c0_52 = arith.constant 0 : index
      %92 = vector.load %arg2[%c0_50, %c0_51, %c0_52] : memref<1x16x32xf32, #tpu.memory_space<vmem>>, vector<1x16x32xf32>
      %93 = vector.shape_cast %92 : vector<1x16x32xf32> to vector<16x32xf32>
      %c0_53 = arith.constant 0 : index
      %c0_54 = arith.constant 0 : index
      %94 = vector.load %arg3[%c0_53, %c0_54] : memref<32x96xf32, #tpu.memory_space<vmem>>, vector<32x96xf32>
      %cst_55 = arith.constant dense<0.000000e+00> : vector<16x96xf32>
      %95 = tpu.matmul %93, %94, %cst_55 {dimension_numbers = #tpu.dot_dimension_numbers<[1], [0], [0], [1], [0, 0, 1, 1], [], []>} : vector<16x32xf32>, vector<32x96xf32>, vector<16x96xf32> -> vector<16x96xf32>
      %c0_56 = arith.constant 0 : index
      %c0_57 = arith.constant 0 : index
      %96 = vector.load %arg4[%c0_56, %c0_57] : memref<1x96xf32, #tpu.memory_space<vmem>>, vector<1x96xf32>
      %97 = vector.broadcast %96 : vector<1x96xf32> to vector<16x96xf32>
      %98 = arith.addf %95, %97 : vector<16x96xf32>
      %c0_58 = arith.constant 0 : index
      %c0_59 = arith.constant 0 : index
      %99 = vector.load %arg9[%c0_58, %c0_59] : memref<16x96xf32, #tpu.memory_space<vmem>>, vector<16x96xf32>
      tpu.vector_store %arg9[%c0_58, %c0_59], %98 {strides = array<i32>} : memref<16x96xf32, #tpu.memory_space<vmem>>, vector<16x96xf32>,
    } else {
    }
    %c8_i32 = arith.constant 8 : i32
    %3 = arith.muli %arg1, %c8_i32 : i32
    %4 = tpu.assume_multiple %3, 8 : i32
    %5 = arith.index_cast %4 : i32 to index
    %c0 = arith.constant 0 : index
    %6 = vector.load %arg9[%5, %c0] : memref<16x96xf32, #tpu.memory_space<vmem>>, vector<8x32xf32>
    %7 = vector.extract_strided_slice %6 {offsets = [0, 0], sizes = [8, 8], strides = [1, 1]} : vector<8x32xf32> to vector<8x8xf32>
    %c0_1 = arith.constant 0 : index
    %c32 = arith.constant 32 : index
    %8 = vector.load %arg9[%c0_1, %c32] : memref<16x96xf32, #tpu.memory_space<vmem>>, vector<16x8xf32>
    %c0_2 = arith.constant 0 : index
    %c64 = arith.constant 64 : index
    %9 = vector.load %arg9[%c0_2, %c64] : memref<16x96xf32, #tpu.memory_space<vmem>>, vector<16x8xf32>
    %cst = arith.constant dense<0.000000e+00> : vector<8x16xf32>
    %10 = tpu.matmul %7, %8, %cst {dimension_numbers = #tpu.dot_dimension_numbers<[1], [1], [0], [0], [0, 0, 1, 0], [], []>} : vector<8x8xf32>, vector<16x8xf32>, vector<8x16xf32> -> vector<8x16xf32>
    %cst_3 = arith.constant dense<0xFF800000> : vector<8xf32>
    %11 = vector.multi_reduction <maximumf>, %10, %cst_3 [1] : vector<8x16xf32> to vector<8xf32>
    %12 = vector.shape_cast %11 : vector<8xf32> to vector<8x1xf32>
    %13 = vector.broadcast %12 : vector<8x1xf32> to vector<8x16xf32>
    %14 = arith.subf %10, %13 : vector<8x16xf32>
    %15 = math.exp %14 : vector<8x16xf32>
    %cst_4 = arith.constant dense<0.000000e+00> : vector<8xf32>
    %16 = vector.multi_reduction <add>, %15, %cst_4 [1] : vector<8x16xf32> to vector<8xf32>
    %17 = vector.shape_cast %16 : vector<8xf32> to vector<8x1xf32>
    %18 = tpu.reciprocal %17 {approx = true} : vector<8x1xf32> -> vector<8x1xf32>
    %19 = vector.broadcast %18 : vector<8x1xf32> to vector<8x16xf32>
    %20 = arith.mulf %15, %19 : vector<8x16xf32>
    %c0_5 = arith.constant 0 : index
    %c0_6 = arith.constant 0 : index
    %c0_7 = arith.constant 0 : index
    %c0_8 = arith.constant 0 : index
    %21 = vector.load %arg8[%c0_5, %c0_6, %c0_7, %c0_8] : memref<1x4x8x16xf32, #tpu.memory_space<vmem>>, vector<1x1x8x16xf32>
    %22 = vector.shape_cast %21 : vector<1x1x8x16xf32> to vector<8x16xf32>
    %23 = vector.shape_cast %20 : vector<8x16xf32> to vector<1x1x8x16xf32>
    tpu.vector_store %arg8[%c0_5, %c0_6, %c0_7, %c0_8], %23 {strides = array<i32>} : memref<1x4x8x16xf32, #tpu.memory_space<vmem>>, vector<1x1x8x16xf32>,
    %cst_9 = arith.constant dense<0.000000e+00> : vector<8x8xf32>
    %24 = tpu.matmul %20, %9, %cst_9 {dimension_numbers = #tpu.dot_dimension_numbers<[1], [0], [0], [1], [0, 0, 1, 1], [], []>} : vector<8x16xf32>, vector<16x8xf32>, vector<8x8xf32> -> vector<8x8xf32>
    %25 = vector.extract_strided_slice %6 {offsets = [0, 8], sizes = [8, 8], strides = [1, 1]} : vector<8x32xf32> to vector<8x8xf32>
    %c0_10 = arith.constant 0 : index
    %c40 = arith.constant 40 : index
    %26 = vector.load %arg9[%c0_10, %c40] : memref<16x96xf32, #tpu.memory_space<vmem>>, vector<16x8xf32>
    %c0_11 = arith.constant 0 : index
    %c72 = arith.constant 72 : index
    %27 = vector.load %arg9[%c0_11, %c72] : memref<16x96xf32, #tpu.memory_space<vmem>>, vector<16x8xf32>
    %cst_12 = arith.constant dense<0.000000e+00> : vector<8x16xf32>
    %28 = tpu.matmul %25, %26, %cst_12 {dimension_numbers = #tpu.dot_dimension_numbers<[1], [1], [0], [0], [0, 0, 1, 0], [], []>} : vector<8x8xf32>, vector<16x8xf32>, vector<8x16xf32> -> vector<8x16xf32>
    %cst_13 = arith.constant dense<0xFF800000> : vector<8xf32>
    %29 = vector.multi_reduction <maximumf>, %28, %cst_13 [1] : vector<8x16xf32> to vector<8xf32>
    %30 = vector.shape_cast %29 : vector<8xf32> to vector<8x1xf32>
    %31 = vector.broadcast %30 : vector<8x1xf32> to vector<8x16xf32>
    %32 = arith.subf %28, %31 : vector<8x16xf32>
    %33 = math.exp %32 : vector<8x16xf32>
    %cst_14 = arith.constant dense<0.000000e+00> : vector<8xf32>
    %34 = vector.multi_reduction <add>, %33, %cst_14 [1] : vector<8x16xf32> to vector<8xf32>
    %35 = vector.shape_cast %34 : vector<8xf32> to vector<8x1xf32>
    %36 = tpu.reciprocal %35 {approx = true} : vector<8x1xf32> -> vector<8x1xf32>
    %37 = vector.broadcast %36 : vector<8x1xf32> to vector<8x16xf32>
    %38 = arith.mulf %33, %37 : vector<8x16xf32>
    %c0_15 = arith.constant 0 : index
    %c1 = arith.constant 1 : index
    %c0_16 = arith.constant 0 : index
    %c0_17 = arith.constant 0 : index
    %39 = vector.load %arg8[%c0_15, %c1, %c0_16, %c0_17] : memref<1x4x8x16xf32, #tpu.memory_space<vmem>>, vector<1x1x8x16xf32>
    %40 = vector.shape_cast %39 : vector<1x1x8x16xf32> to vector<8x16xf32>
    %41 = vector.shape_cast %38 : vector<8x16xf32> to vector<1x1x8x16xf32>
    tpu.vector_store %arg8[%c0_15, %c1, %c0_16, %c0_17], %41 {strides = array<i32>} : memref<1x4x8x16xf32, #tpu.memory_space<vmem>>, vector<1x1x8x16xf32>,
    %cst_18 = arith.constant dense<0.000000e+00> : vector<8x8xf32>
    %42 = tpu.matmul %38, %27, %cst_18 {dimension_numbers = #tpu.dot_dimension_numbers<[1], [0], [0], [1], [0, 0, 1, 1], [], []>} : vector<8x16xf32>, vector<16x8xf32>, vector<8x8xf32> -> vector<8x8xf32>
    %43 = tpu.concatenate %24, %42 in 1 : vector<8x8xf32>, vector<8x8xf32> -> vector<8x16xf32>
    %c0_19 = arith.constant 0 : index
    %c0_20 = arith.constant 0 : index
    %44 = vector.load %arg10[%c0_19, %c0_20] : memref<8x32xf32, #tpu.memory_space<vmem>>, vector<8x16xf32>
    tpu.vector_store %arg10[%c0_19, %c0_20], %43 {strides = array<i32>} : memref<8x32xf32, #tpu.memory_space<vmem>>, vector<8x16xf32>,
    %45 = vector.extract_strided_slice %6 {offsets = [0, 16], sizes = [8, 8], strides = [1, 1]} : vector<8x32xf32> to vector<8x8xf32>
    %c0_21 = arith.constant 0 : index
    %c48 = arith.constant 48 : index
    %46 = vector.load %arg9[%c0_21, %c48] : memref<16x96xf32, #tpu.memory_space<vmem>>, vector<16x8xf32>
    %c0_22 = arith.constant 0 : index
    %c80 = arith.constant 80 : index
    %47 = vector.load %arg9[%c0_22, %c80] : memref<16x96xf32, #tpu.memory_space<vmem>>, vector<16x8xf32>
    %cst_23 = arith.constant dense<0.000000e+00> : vector<8x16xf32>
    %48 = tpu.matmul %45, %46, %cst_23 {dimension_numbers = #tpu.dot_dimension_numbers<[1], [1], [0], [0], [0, 0, 1, 0], [], []>} : vector<8x8xf32>, vector<16x8xf32>, vector<8x16xf32> -> vector<8x16xf32>
    %cst_24 = arith.constant dense<0xFF800000> : vector<8xf32>
    %49 = vector.multi_reduction <maximumf>, %48, %cst_24 [1] : vector<8x16xf32> to vector<8xf32>
    %50 = vector.shape_cast %49 : vector<8xf32> to vector<8x1xf32>
    %51 = vector.broadcast %50 : vector<8x1xf32> to vector<8x16xf32>
    %52 = arith.subf %48, %51 : vector<8x16xf32>
    %53 = math.exp %52 : vector<8x16xf32>
    %cst_25 = arith.constant dense<0.000000e+00> : vector<8xf32>
    %54 = vector.multi_reduction <add>, %53, %cst_25 [1] : vector<8x16xf32> to vector<8xf32>
    %55 = vector.shape_cast %54 : vector<8xf32> to vector<8x1xf32>
    %56 = tpu.reciprocal %55 {approx = true} : vector<8x1xf32> -> vector<8x1xf32>
    %57 = vector.broadcast %56 : vector<8x1xf32> to vector<8x16xf32>
    %58 = arith.mulf %53, %57 : vector<8x16xf32>
    %c0_26 = arith.constant 0 : index
    %c2 = arith.constant 2 : index
    %c0_27 = arith.constant 0 : index
    %c0_28 = arith.constant 0 : index
    %59 = vector.load %arg8[%c0_26, %c2, %c0_27, %c0_28] : memref<1x4x8x16xf32, #tpu.memory_space<vmem>>, vector<1x1x8x16xf32>
    %60 = vector.shape_cast %59 : vector<1x1x8x16xf32> to vector<8x16xf32>
    %61 = vector.shape_cast %58 : vector<8x16xf32> to vector<1x1x8x16xf32>
    tpu.vector_store %arg8[%c0_26, %c2, %c0_27, %c0_28], %61 {strides = array<i32>} : memref<1x4x8x16xf32, #tpu.memory_space<vmem>>, vector<1x1x8x16xf32>,
    %cst_29 = arith.constant dense<0.000000e+00> : vector<8x8xf32>
    %62 = tpu.matmul %58, %47, %cst_29 {dimension_numbers = #tpu.dot_dimension_numbers<[1], [0], [0], [1], [0, 0, 1, 1], [], []>} : vector<8x16xf32>, vector<16x8xf32>, vector<8x8xf32> -> vector<8x8xf32>
    %63 = vector.extract_strided_slice %6 {offsets = [0, 24], sizes = [8, 8], strides = [1, 1]} : vector<8x32xf32> to vector<8x8xf32>
    %c0_30 = arith.constant 0 : index
    %c56 = arith.constant 56 : index
    %64 = vector.load %arg9[%c0_30, %c56] : memref<16x96xf32, #tpu.memory_space<vmem>>, vector<16x8xf32>
    %c0_31 = arith.constant 0 : index
    %c88 = arith.constant 88 : index
    %65 = vector.load %arg9[%c0_31, %c88] : memref<16x96xf32, #tpu.memory_space<vmem>>, vector<16x8xf32>
    %cst_32 = arith.constant dense<0.000000e+00> : vector<8x16xf32>
    %66 = tpu.matmul %63, %64, %cst_32 {dimension_numbers = #tpu.dot_dimension_numbers<[1], [1], [0], [0], [0, 0, 1, 0], [], []>} : vector<8x8xf32>, vector<16x8xf32>, vector<8x16xf32> -> vector<8x16xf32>
    %cst_33 = arith.constant dense<0xFF800000> : vector<8xf32>
    %67 = vector.multi_reduction <maximumf>, %66, %cst_33 [1] : vector<8x16xf32> to vector<8xf32>
    %68 = vector.shape_cast %67 : vector<8xf32> to vector<8x1xf32>
    %69 = vector.broadcast %68 : vector<8x1xf32> to vector<8x16xf32>
    %70 = arith.subf %66, %69 : vector<8x16xf32>
    %71 = math.exp %70 : vector<8x16xf32>
    %cst_34 = arith.constant dense<0.000000e+00> : vector<8xf32>
    %72 = vector.multi_reduction <add>, %71, %cst_34 [1] : vector<8x16xf32> to vector<8xf32>
    %73 = vector.shape_cast %72 : vector<8xf32> to vector<8x1xf32>
    %74 = tpu.reciprocal %73 {approx = true} : vector<8x1xf32> -> vector<8x1xf32>
    %75 = vector.broadcast %74 : vector<8x1xf32> to vector<8x16xf32>
    %76 = arith.mulf %71, %75 : vector<8x16xf32>
    %c0_35 = arith.constant 0 : index
    %c3 = arith.constant 3 : index
    %c0_36 = arith.constant 0 : index
    %c0_37 = arith.constant 0 : index
    %77 = vector.load %arg8[%c0_35, %c3, %c0_36, %c0_37] : memref<1x4x8x16xf32, #tpu.memory_space<vmem>>, vector<1x1x8x16xf32>
    %78 = vector.shape_cast %77 : vector<1x1x8x16xf32> to vector<8x16xf32>
    %79 = vector.shape_cast %76 : vector<8x16xf32> to vector<1x1x8x16xf32>
    tpu.vector_store %arg8[%c0_35, %c3, %c0_36, %c0_37], %79 {strides = array<i32>} : memref<1x4x8x16xf32, #tpu.memory_space<vmem>>, vector<1x1x8x16xf32>,
    %cst_38 = arith.constant dense<0.000000e+00> : vector<8x8xf32>
    %80 = tpu.matmul %76, %65, %cst_38 {dimension_numbers = #tpu.dot_dimension_numbers<[1], [0], [0], [1], [0, 0, 1, 1], [], []>} : vector<8x16xf32>, vector<16x8xf32>, vector<8x8xf32> -> vector<8x8xf32>
    %81 = tpu.concatenate %62, %80 in 1 : vector<8x8xf32>, vector<8x8xf32> -> vector<8x16xf32>
    %c0_39 = arith.constant 0 : index
    %c16 = arith.constant 16 : index
    %82 = vector.load %arg10[%c0_39, %c16] : memref<8x32xf32, #tpu.memory_space<vmem>>, vector<8x16xf32>
    tpu.vector_store %arg10[%c0_39, %c16], %81 {strides = array<i32>} : memref<8x32xf32, #tpu.memory_space<vmem>>, vector<8x16xf32>,
    %c0_40 = arith.constant 0 : index
    %c0_41 = arith.constant 0 : index
    %83 = vector.load %arg10[%c0_40, %c0_41] : memref<8x32xf32, #tpu.memory_space<vmem>>, vector<8x32xf32>
    %c0_42 = arith.constant 0 : index
    %c0_43 = arith.constant 0 : index
    %84 = vector.load %arg5[%c0_42, %c0_43] : memref<32x32xf32, #tpu.memory_space<vmem>>, vector<32x32xf32>
    %cst_44 = arith.constant dense<0.000000e+00> : vector<8x32xf32>
    %85 = tpu.matmul %83, %84, %cst_44 {dimension_numbers = #tpu.dot_dimension_numbers<[1], [0], [0], [1], [0, 0, 1, 1], [], []>} : vector<8x32xf32>, vector<32x32xf32>, vector<8x32xf32> -> vector<8x32xf32>
    %c0_45 = arith.constant 0 : index
    %c0_46 = arith.constant 0 : index
    %86 = vector.load %arg6[%c0_45, %c0_46] : memref<1x32xf32, #tpu.memory_space<vmem>>, vector<1x32xf32>
    %87 = vector.broadcast %86 : vector<1x32xf32> to vector<8x32xf32>
    %88 = arith.addf %85, %87 : vector<8x32xf32>
    %c0_47 = arith.constant 0 : index
    %c0_48 = arith.constant 0 : index
    %c0_49 = arith.constant 0 : index
    %89 = vector.load %arg7[%c0_47, %c0_48, %c0_49] : memref<1x8x32xf32, #tpu.memory_space<vmem>>, vector<1x8x32xf32>
    %90 = vector.shape_cast %89 : vector<1x8x32xf32> to vector<8x32xf32>
    %91 = vector.shape_cast %88 : vector<8x32xf32> to vector<1x8x32xf32>
    tpu.vector_store %arg7[%c0_47, %c0_48, %c0_49], %91 {strides = array<i32>} : memref<1x8x32xf32, #tpu.memory_space<vmem>>, vector<1x8x32xf32>,
    return
  }
  func.func @transform_0(%arg0: i32, %arg1: i32) -> (i32, i32, i32) {
    %c0_i32 = arith.constant 0 : i32
    %c0_i32_0 = arith.constant 0 : i32
    %c0_i32_1 = arith.constant 0 : i32
    return %arg0, %c0_i32, %c0_i32_0 : i32, i32, i32
  }
  func.func @transform_1(%arg0: i32, %arg1: i32) -> (i32, i32) {
    %c0_i32 = arith.constant 0 : i32
    %c0_i32_0 = arith.constant 0 : i32
    %c0_i32_1 = arith.constant 0 : i32
    return %c0_i32, %c0_i32_0 : i32, i32
  }
  func.func @transform_2(%arg0: i32, %arg1: i32) -> (i32, i32) {
    %c0_i32 = arith.constant 0 : i32
    %c0_i32_0 = arith.constant 0 : i32
    %c0_i32_1 = arith.constant 0 : i32
    return %c0_i32, %c0_i32_0 : i32, i32
  }
  func.func @transform_3(%arg0: i32, %arg1: i32) -> (i32, i32) {
    %c0_i32 = arith.constant 0 : i32
    %c0_i32_0 = arith.constant 0 : i32
    %c0_i32_1 = arith.constant 0 : i32
    return %c0_i32, %c0_i32_0 : i32, i32
  }
  func.func @transform_4(%arg0: i32, %arg1: i32) -> (i32, i32) {
    %c0_i32 = arith.constant 0 : i32
    %c0_i32_0 = arith.constant 0 : i32
    %c0_i32_1 = arith.constant 0 : i32
    return %c0_i32, %c0_i32_0 : i32, i32
  }
  func.func @transform_5(%arg0: i32, %arg1: i32) -> (i32, i32, i32) {
    %c0_i32 = arith.constant 0 : i32
    %c0_i32_0 = arith.constant 0 : i32
    return %arg0, %arg1, %c0_i32 : i32, i32, i32
  }
  func.func @transform_6(%arg0: i32, %arg1: i32) -> (i32, i32, i32, i32) {
    %c0_i32 = arith.constant 0 : i32
    %c0_i32_0 = arith.constant 0 : i32
    %c0_i32_1 = arith.constant 0 : i32
    return %arg0, %c0_i32, %arg1, %c0_i32_0 : i32, i32, i32, i32
  }
}

module attributes {stable_mosaic.version = 11 : i64} {
  func.func @fused_attention_kernel(%arg0: i32, %arg1: i32, %arg2: memref<1x16x32xf32, #tpu.memory_space<vmem>>, %arg3: memref<32x96xf32, #tpu.memory_space<vmem>>, %arg4: memref<1x96xf32, #tpu.memory_space<vmem>>, %arg5: memref<32x32xf32, #tpu.memory_space<vmem>>, %arg6: memref<1x32xf32, #tpu.memory_space<vmem>>, %arg7: memref<1x8x32xf32, #tpu.memory_space<vmem>>, %arg8: memref<1x4x8x16xf32, #tpu.memory_space<vmem>>, %arg9: memref<16x96xf32, #tpu.memory_space<vmem>>, %arg10: memref<8x32xf32, #tpu.memory_space<vmem>>) attributes {dimension_semantics = [#tpu.dimension_semantics<parallel>, #tpu.dimension_semantics<arbitrary>], iteration_bounds = array<i64: 2, 2>, scalar_prefetch = 0 : i64, scratch_operands = 2 : i64, tpu.core_type = #tpu.core_type<tc>, window_params = [{transform_indices = @transform_0, window_bounds = array<i64: 1, 16, 32>}, {pipeline_mode = #tpu.pipeline_mode<synchronous>, transform_indices = @transform_1, window_bounds = array<i64: 32, 96>}, {pipeline_mode = #tpu.pipeline_mode<synchronous>, transform_indices = @transform_2, window_bounds = array<i64: 1, 96>}, {pipeline_mode = #tpu.pipeline_mode<synchronous>, transform_indices = @transform_3, window_bounds = array<i64: 32, 32>}, {pipeline_mode = #tpu.pipeline_mode<synchronous>, transform_indices = @transform_4, window_bounds = array<i64: 1, 32>}, {transform_indices = @transform_5, window_bounds = array<i64: 1, 8, 32>}, {transform_indices = @transform_6, window_bounds = array<i64: 1, 4, 8, 16>}]} {
    %c0_i32 = arith.constant 0 : i32
    %0 = arith.cmpi eq, %arg1, %c0_i32 : i32
    %1 = arith.extui %0 : i1 to i32
    %c0_i32_0 = arith.constant 0 : i32
    %2 = arith.cmpi ne, %1, %c0_i32_0 : i32
    scf.if %2 {
      %c0_50 = arith.constant 0 : index
      %c0_51 = arith.constant 0 : index
      %c0_52 = arith.constant 0 : index
      %92 = vector.load %arg2[%c0_50, %c0_51, %c0_52] : memref<1x16x32xf32, #tpu.memory_space<vmem>>, vector<1x16x32xf32>
      %93 = vector.shape_cast %92 : vector<1x16x32xf32> to vector<16x32xf32>
      %c0_53 = arith.constant 0 : index
      %c0_54 = arith.constant 0 : index
      %94 = vector.load %arg3[%c0_53, %c0_54] : memref<32x96xf32, #tpu.memory_space<vmem>>, vector<32x96xf32>
      %cst_55 = arith.constant dense<0.000000e+00> : vector<16x96xf32>
      %95 = tpu.matmul %93, %94, %cst_55 {dimension_numbers = #tpu.dot_dimension_numbers<[1], [0], [0], [1], [0, 0, 1, 1], [], []>} : vector<16x32xf32>, vector<32x96xf32>, vector<16x96xf32> -> vector<16x96xf32>
      %c0_56 = arith.constant 0 : index
      %c0_57 = arith.constant 0 : index
      %96 = vector.load %arg4[%c0_56, %c0_57] : memref<1x96xf32, #tpu.memory_space<vmem>>, vector<1x96xf32>
      %97 = vector.broadcast %96 : vector<1x96xf32> to vector<16x96xf32>
      %98 = arith.addf %95, %97 : vector<16x96xf32>
      %c0_58 = arith.constant 0 : index
      %c0_59 = arith.constant 0 : index
      %99 = vector.load %arg9[%c0_58, %c0_59] : memref<16x96xf32, #tpu.memory_space<vmem>>, vector<16x96xf32>
      tpu.vector_store %arg9[%c0_58, %c0_59], %98 {strides = array<i32>} : memref<16x96xf32, #tpu.memory_space<vmem>>, vector<16x96xf32>,
    } else {
    }
    %c8_i32 = arith.constant 8 : i32
    %3 = arith.muli %arg1, %c8_i32 : i32
    %4 = tpu.assume_multiple %3, 8 : i32
    %5 = arith.index_cast %4 : i32 to index
    %c0 = arith.constant 0 : index
    %6 = vector.load %arg9[%5, %c0] : memref<16x96xf32, #tpu.memory_space<vmem>>, vector<8x32xf32>
    %7 = vector.extract_strided_slice %6 {offsets = [0, 0], sizes = [8, 8], strides = [1, 1]} : vector<8x32xf32> to vector<8x8xf32>
    %c0_1 = arith.constant 0 : index
    %c32 = arith.constant 32 : index
    %8 = vector.load %arg9[%c0_1, %c32] : memref<16x96xf32, #tpu.memory_space<vmem>>, vector<16x8xf32>
    %c0_2 = arith.constant 0 : index
    %c64 = arith.constant 64 : index
    %9 = vector.load %arg9[%c0_2, %c64] : memref<16x96xf32, #tpu.memory_space<vmem>>, vector<16x8xf32>
    %cst = arith.constant dense<0.000000e+00> : vector<8x16xf32>
    %10 = tpu.matmul %7, %8, %cst {dimension_numbers = #tpu.dot_dimension_numbers<[1], [1], [0], [0], [0, 0, 1, 0], [], []>} : vector<8x8xf32>, vector<16x8xf32>, vector<8x16xf32> -> vector<8x16xf32>
    %cst_3 = arith.constant dense<0xFF800000> : vector<8xf32>
    %11 = vector.multi_reduction <maximumf>, %10, %cst_3 [1] : vector<8x16xf32> to vector<8xf32>
    %12 = vector.shape_cast %11 : vector<8xf32> to vector<8x1xf32>
    %13 = vector.broadcast %12 : vector<8x1xf32> to vector<8x16xf32>
    %14 = arith.subf %10, %13 : vector<8x16xf32>
    %15 = math.exp %14 : vector<8x16xf32>
    %cst_4 = arith.constant dense<0.000000e+00> : vector<8xf32>
    %16 = vector.multi_reduction <add>, %15, %cst_4 [1] : vector<8x16xf32> to vector<8xf32>
    %17 = vector.shape_cast %16 : vector<8xf32> to vector<8x1xf32>
    %18 = tpu.reciprocal %17 {approx = true} : vector<8x1xf32> -> vector<8x1xf32>
    %19 = vector.broadcast %18 : vector<8x1xf32> to vector<8x16xf32>
    %20 = arith.mulf %15, %19 : vector<8x16xf32>
    %c0_5 = arith.constant 0 : index
    %c0_6 = arith.constant 0 : index
    %c0_7 = arith.constant 0 : index
    %c0_8 = arith.constant 0 : index
    %21 = vector.load %arg8[%c0_5, %c0_6, %c0_7, %c0_8] : memref<1x4x8x16xf32, #tpu.memory_space<vmem>>, vector<1x1x8x16xf32>
    %22 = vector.shape_cast %21 : vector<1x1x8x16xf32> to vector<8x16xf32>
    %23 = vector.shape_cast %20 : vector<8x16xf32> to vector<1x1x8x16xf32>
    tpu.vector_store %arg8[%c0_5, %c0_6, %c0_7, %c0_8], %23 {strides = array<i32>} : memref<1x4x8x16xf32, #tpu.memory_space<vmem>>, vector<1x1x8x16xf32>,
    %cst_9 = arith.constant dense<0.000000e+00> : vector<8x8xf32>
    %24 = tpu.matmul %20, %9, %cst_9 {dimension_numbers = #tpu.dot_dimension_numbers<[1], [0], [0], [1], [0, 0, 1, 1], [], []>} : vector<8x16xf32>, vector<16x8xf32>, vector<8x8xf32> -> vector<8x8xf32>
    %25 = vector.extract_strided_slice %6 {offsets = [0, 8], sizes = [8, 8], strides = [1, 1]} : vector<8x32xf32> to vector<8x8xf32>
    %c0_10 = arith.constant 0 : index
    %c40 = arith.constant 40 : index
    %26 = vector.load %arg9[%c0_10, %c40] : memref<16x96xf32, #tpu.memory_space<vmem>>, vector<16x8xf32>
    %c0_11 = arith.constant 0 : index
    %c72 = arith.constant 72 : index
    %27 = vector.load %arg9[%c0_11, %c72] : memref<16x96xf32, #tpu.memory_space<vmem>>, vector<16x8xf32>
    %cst_12 = arith.constant dense<0.000000e+00> : vector<8x16xf32>
    %28 = tpu.matmul %25, %26, %cst_12 {dimension_numbers = #tpu.dot_dimension_numbers<[1], [1], [0], [0], [0, 0, 1, 0], [], []>} : vector<8x8xf32>, vector<16x8xf32>, vector<8x16xf32> -> vector<8x16xf32>
    %cst_13 = arith.constant dense<0xFF800000> : vector<8xf32>
    %29 = vector.multi_reduction <maximumf>, %28, %cst_13 [1] : vector<8x16xf32> to vector<8xf32>
    %30 = vector.shape_cast %29 : vector<8xf32> to vector<8x1xf32>
    %31 = vector.broadcast %30 : vector<8x1xf32> to vector<8x16xf32>
    %32 = arith.subf %28, %31 : vector<8x16xf32>
    %33 = math.exp %32 : vector<8x16xf32>
    %cst_14 = arith.constant dense<0.000000e+00> : vector<8xf32>
    %34 = vector.multi_reduction <add>, %33, %cst_14 [1] : vector<8x16xf32> to vector<8xf32>
    %35 = vector.shape_cast %34 : vector<8xf32> to vector<8x1xf32>
    %36 = tpu.reciprocal %35 {approx = true} : vector<8x1xf32> -> vector<8x1xf32>
    %37 = vector.broadcast %36 : vector<8x1xf32> to vector<8x16xf32>
    %38 = arith.mulf %33, %37 : vector<8x16xf32>
    %c0_15 = arith.constant 0 : index
    %c1 = arith.constant 1 : index
    %c0_16 = arith.constant 0 : index
    %c0_17 = arith.constant 0 : index
    %39 = vector.load %arg8[%c0_15, %c1, %c0_16, %c0_17] : memref<1x4x8x16xf32, #tpu.memory_space<vmem>>, vector<1x1x8x16xf32>
    %40 = vector.shape_cast %39 : vector<1x1x8x16xf32> to vector<8x16xf32>
    %41 = vector.shape_cast %38 : vector<8x16xf32> to vector<1x1x8x16xf32>
    tpu.vector_store %arg8[%c0_15, %c1, %c0_16, %c0_17], %41 {strides = array<i32>} : memref<1x4x8x16xf32, #tpu.memory_space<vmem>>, vector<1x1x8x16xf32>,
    %cst_18 = arith.constant dense<0.000000e+00> : vector<8x8xf32>
    %42 = tpu.matmul %38, %27, %cst_18 {dimension_numbers = #tpu.dot_dimension_numbers<[1], [0], [0], [1], [0, 0, 1, 1], [], []>} : vector<8x16xf32>, vector<16x8xf32>, vector<8x8xf32> -> vector<8x8xf32>
    %43 = tpu.concatenate %24, %42 in 1 : vector<8x8xf32>, vector<8x8xf32> -> vector<8x16xf32>
    %c0_19 = arith.constant 0 : index
    %c0_20 = arith.constant 0 : index
    %44 = vector.load %arg10[%c0_19, %c0_20] : memref<8x32xf32, #tpu.memory_space<vmem>>, vector<8x16xf32>
    tpu.vector_store %arg10[%c0_19, %c0_20], %43 {strides = array<i32>} : memref<8x32xf32, #tpu.memory_space<vmem>>, vector<8x16xf32>,
    %45 = vector.extract_strided_slice %6 {offsets = [0, 16], sizes = [8, 8], strides = [1, 1]} : vector<8x32xf32> to vector<8x8xf32>
    %c0_21 = arith.constant 0 : index
    %c48 = arith.constant 48 : index
    %46 = vector.load %arg9[%c0_21, %c48] : memref<16x96xf32, #tpu.memory_space<vmem>>, vector<16x8xf32>
    %c0_22 = arith.constant 0 : index
    %c80 = arith.constant 80 : index
    %47 = vector.load %arg9[%c0_22, %c80] : memref<16x96xf32, #tpu.memory_space<vmem>>, vector<16x8xf32>
    %cst_23 = arith.constant dense<0.000000e+00> : vector<8x16xf32>
    %48 = tpu.matmul %45, %46, %cst_23 {dimension_numbers = #tpu.dot_dimension_numbers<[1], [1], [0], [0], [0, 0, 1, 0], [], []>} : vector<8x8xf32>, vector<16x8xf32>, vector<8x16xf32> -> vector<8x16xf32>
    %cst_24 = arith.constant dense<0xFF800000> : vector<8xf32>
    %49 = vector.multi_reduction <maximumf>, %48, %cst_24 [1] : vector<8x16xf32> to vector<8xf32>
    %50 = vector.shape_cast %49 : vector<8xf32> to vector<8x1xf32>
    %51 = vector.broadcast %50 : vector<8x1xf32> to vector<8x16xf32>
    %52 = arith.subf %48, %51 : vector<8x16xf32>
    %53 = math.exp %52 : vector<8x16xf32>
    %cst_25 = arith.constant dense<0.000000e+00> : vector<8xf32>
    %54 = vector.multi_reduction <add>, %53, %cst_25 [1] : vector<8x16xf32> to vector<8xf32>
    %55 = vector.shape_cast %54 : vector<8xf32> to vector<8x1xf32>
    %56 = tpu.reciprocal %55 {approx = true} : vector<8x1xf32> -> vector<8x1xf32>
    %57 = vector.broadcast %56 : vector<8x1xf32> to vector<8x16xf32>
    %58 = arith.mulf %53, %57 : vector<8x16xf32>
    %c0_26 = arith.constant 0 : index
    %c2 = arith.constant 2 : index
    %c0_27 = arith.constant 0 : index
    %c0_28 = arith.constant 0 : index
    %59 = vector.load %arg8[%c0_26, %c2, %c0_27, %c0_28] : memref<1x4x8x16xf32, #tpu.memory_space<vmem>>, vector<1x1x8x16xf32>
    %60 = vector.shape_cast %59 : vector<1x1x8x16xf32> to vector<8x16xf32>
    %61 = vector.shape_cast %58 : vector<8x16xf32> to vector<1x1x8x16xf32>
    tpu.vector_store %arg8[%c0_26, %c2, %c0_27, %c0_28], %61 {strides = array<i32>} : memref<1x4x8x16xf32, #tpu.memory_space<vmem>>, vector<1x1x8x16xf32>,
    %cst_29 = arith.constant dense<0.000000e+00> : vector<8x8xf32>
    %62 = tpu.matmul %58, %47, %cst_29 {dimension_numbers = #tpu.dot_dimension_numbers<[1], [0], [0], [1], [0, 0, 1, 1], [], []>} : vector<8x16xf32>, vector<16x8xf32>, vector<8x8xf32> -> vector<8x8xf32>
    %63 = vector.extract_strided_slice %6 {offsets = [0, 24], sizes = [8, 8], strides = [1, 1]} : vector<8x32xf32> to vector<8x8xf32>
    %c0_30 = arith.constant 0 : index
    %c56 = arith.constant 56 : index
    %64 = vector.load %arg9[%c0_30, %c56] : memref<16x96xf32, #tpu.memory_space<vmem>>, vector<16x8xf32>
    %c0_31 = arith.constant 0 : index
    %c88 = arith.constant 88 : index
    %65 = vector.load %arg9[%c0_31, %c88] : memref<16x96xf32, #tpu.memory_space<vmem>>, vector<16x8xf32>
    %cst_32 = arith.constant dense<0.000000e+00> : vector<8x16xf32>
    %66 = tpu.matmul %63, %64, %cst_32 {dimension_numbers = #tpu.dot_dimension_numbers<[1], [1], [0], [0], [0, 0, 1, 0], [], []>} : vector<8x8xf32>, vector<16x8xf32>, vector<8x16xf32> -> vector<8x16xf32>
    %cst_33 = arith.constant dense<0xFF800000> : vector<8xf32>
    %67 = vector.multi_reduction <maximumf>, %66, %cst_33 [1] : vector<8x16xf32> to vector<8xf32>
    %68 = vector.shape_cast %67 : vector<8xf32> to vector<8x1xf32>
    %69 = vector.broadcast %68 : vector<8x1xf32> to vector<8x16xf32>
    %70 = arith.subf %66, %69 : vector<8x16xf32>
    %71 = math.exp %70 : vector<8x16xf32>
    %cst_34 = arith.constant dense<0.000000e+00> : vector<8xf32>
    %72 = vector.multi_reduction <add>, %71, %cst_34 [1] : vector<8x16xf32> to vector<8xf32>
    %73 = vector.shape_cast %72 : vector<8xf32> to vector<8x1xf32>
    %74 = tpu.reciprocal %73 {approx = true} : vector<8x1xf32> -> vector<8x1xf32>
    %75 = vector.broadcast %74 : vector<8x1xf32> to vector<8x16xf32>
    %76 = arith.mulf %71, %75 : vector<8x16xf32>
    %c0_35 = arith.constant 0 : index
    %c3 = arith.constant 3 : index
    %c0_36 = arith.constant 0 : index
    %c0_37 = arith.constant 0 : index
    %77 = vector.load %arg8[%c0_35, %c3, %c0_36, %c0_37] : memref<1x4x8x16xf32, #tpu.memory_space<vmem>>, vector<1x1x8x16xf32>
    %78 = vector.shape_cast %77 : vector<1x1x8x16xf32> to vector<8x16xf32>
    %79 = vector.shape_cast %76 : vector<8x16xf32> to vector<1x1x8x16xf32>
    tpu.vector_store %arg8[%c0_35, %c3, %c0_36, %c0_37], %79 {strides = array<i32>} : memref<1x4x8x16xf32, #tpu.memory_space<vmem>>, vector<1x1x8x16xf32>,
    %cst_38 = arith.constant dense<0.000000e+00> : vector<8x8xf32>
    %80 = tpu.matmul %76, %65, %cst_38 {dimension_numbers = #tpu.dot_dimension_numbers<[1], [0], [0], [1], [0, 0, 1, 1], [], []>} : vector<8x16xf32>, vector<16x8xf32>, vector<8x8xf32> -> vector<8x8xf32>
    %81 = tpu.concatenate %62, %80 in 1 : vector<8x8xf32>, vector<8x8xf32> -> vector<8x16xf32>
    %c0_39 = arith.constant 0 : index
    %c16 = arith.constant 16 : index
    %82 = vector.load %arg10[%c0_39, %c16] : memref<8x32xf32, #tpu.memory_space<vmem>>, vector<8x16xf32>
    tpu.vector_store %arg10[%c0_39, %c16], %81 {strides = array<i32>} : memref<8x32xf32, #tpu.memory_space<vmem>>, vector<8x16xf32>,
    %c0_40 = arith.constant 0 : index
    %c0_41 = arith.constant 0 : index
    %83 = vector.load %arg10[%c0_40, %c0_41] : memref<8x32xf32, #tpu.memory_space<vmem>>, vector<8x32xf32>
    %c0_42 = arith.constant 0 : index
    %c0_43 = arith.constant 0 : index
    %84 = vector.load %arg5[%c0_42, %c0_43] : memref<32x32xf32, #tpu.memory_space<vmem>>, vector<32x32xf32>
    %cst_44 = arith.constant dense<0.000000e+00> : vector<8x32xf32>
    %85 = tpu.matmul %83, %84, %cst_44 {dimension_numbers = #tpu.dot_dimension_numbers<[1], [0], [0], [1], [0, 0, 1, 1], [], []>} : vector<8x32xf32>, vector<32x32xf32>, vector<8x32xf32> -> vector<8x32xf32>
    %c0_45 = arith.constant 0 : index
    %c0_46 = arith.constant 0 : index
    %86 = vector.load %arg6[%c0_45, %c0_46] : memref<1x32xf32, #tpu.memory_space<vmem>>, vector<1x32xf32>
    %87 = vector.broadcast %86 : vector<1x32xf32> to vector<8x32xf32>
    %88 = arith.addf %85, %87 : vector<8x32xf32>
    %c0_47 = arith.constant 0 : index
    %c0_48 = arith.constant 0 : index
    %c0_49 = arith.constant 0 : index
    %89 = vector.load %arg7[%c0_47, %c0_48, %c0_49] : memref<1x8x32xf32, #tpu.memory_space<vmem>>, vector<1x8x32xf32>
    %90 = vector.shape_cast %89 : vector<1x8x32xf32> to vector<8x32xf32>
    %91 = vector.shape_cast %88 : vector<8x32xf32> to vector<1x8x32xf32>
    tpu.vector_store %arg7[%c0_47, %c0_48, %c0_49], %91 {strides = array<i32>} : memref<1x8x32xf32, #tpu.memory_space<vmem>>, vector<1x8x32xf32>,
    return
  }
  func.func @transform_0(%arg0: i32, %arg1: i32) -> (i32, i32, i32) {
    %c0_i32 = arith.constant 0 : i32
    %c0_i32_0 = arith.constant 0 : i32
    %c0_i32_1 = arith.constant 0 : i32
    return %arg0, %c0_i32, %c0_i32_0 : i32, i32, i32
  }
  func.func @transform_1(%arg0: i32, %arg1: i32) -> (i32, i32) {
    %c0_i32 = arith.constant 0 : i32
    %c0_i32_0 = arith.constant 0 : i32
    %c0_i32_1 = arith.constant 0 : i32
    return %c0_i32, %c0_i32_0 : i32, i32
  }
  func.func @transform_2(%arg0: i32, %arg1: i32) -> (i32, i32) {
    %c0_i32 = arith.constant 0 : i32
    %c0_i32_0 = arith.constant 0 : i32
    %c0_i32_1 = arith.constant 0 : i32
    return %c0_i32, %c0_i32_0 : i32, i32
  }
  func.func @transform_3(%arg0: i32, %arg1: i32) -> (i32, i32) {
    %c0_i32 = arith.constant 0 : i32
    %c0_i32_0 = arith.constant 0 : i32
    %c0_i32_1 = arith.constant 0 : i32
    return %c0_i32, %c0_i32_0 : i32, i32
  }
  func.func @transform_4(%arg0: i32, %arg1: i32) -> (i32, i32) {
    %c0_i32 = arith.constant 0 : i32
    %c0_i32_0 = arith.constant 0 : i32
    %c0_i32_1 = arith.constant 0 : i32
    return %c0_i32, %c0_i32_0 : i32, i32
  }
  func.func @transform_5(%arg0: i32, %arg1: i32) -> (i32, i32, i32) {
    %c0_i32 = arith.constant 0 : i32
    %c0_i32_0 = arith.constant 0 : i32
    return %arg0, %arg1, %c0_i32 : i32, i32, i32
  }
  func.func @transform_6(%arg0: i32, %arg1: i32) -> (i32, i32, i32, i32) {
    %c0_i32 = arith.constant 0 : i32
    %c0_i32_0 = arith.constant 0 : i32
    %c0_i32_1 = arith.constant 0 : i32
    return %arg0, %c0_i32, %arg1, %c0_i32_0 : i32, i32, i32, i32
  }
}

</mosaic_0001>

<bundles_post_ra>
// kernel: tpu_custom_call.1
= control target key start
LH: loop header
LB: loop body
LE: loop exit
PB: predicated region body
PF: predicated region fallthrough
CT: control target
= control target key end

     0   :  { %s2587_s0 = inlined_call_operand.hbm [shape: f32[2,16,32], index: 0, kind: input, shape index: {}]   ;;  %s2588_s1 = inlined_call_operand.hbm [shape: f32[32,96], index: 1, kind: input, shape index: {}]   ;;  %s2589_s2 = inlined_call_operand.vmem [shape: f32[1,96], index: 2, kind: input, shape index: {}]   ;;  %s2590_s3 = inlined_call_operand.hbm [shape: f32[32,32], index: 3, kind: input, shape index: {}]   ;;  %s2591_s4 = inlined_call_operand.vmem [shape: f32[1,32], index: 4, kind: input, shape index: {}]   ;;  %s2592_s5 = inlined_call_operand.hbm [shape: f32[2,16,32], index: 5, kind: output, shape index: {0}]   ;;  %s2593_s6 = inlined_call_operand.hbm [shape: f32[2,4,16,16], index: 6, kind: output, shape index: {1}]  }
   0x1   :  { %2608 = sst [smem:[#allocation21_spill]] %s2587_s0 }
   0x2   :  { %2609 = sst [smem:[#allocation22_spill]] %s2588_s1 }
   0x3   :  { %2610 = sst [smem:[#allocation23_spill]] %s2589_s2 }
   0x4   :  { %2611 = sst [smem:[#allocation24_spill]] %s2590_s3 }
   0x5   :  { %2612 = sst [smem:[#allocation25_spill]] %s2591_s4 }
   0x6   :  { %2613 = sst [smem:[#allocation26_spill]] %s2592_s5 }
   0x7   :  { %2614 = sst [smem:[#allocation27_spill]] %s2593_s6 }
   0x8   :  { %12 = vsyncpa [#allocation5], 0 }
   0x9   :  { %14 = vsyncpa [#allocation5 + $0x1], 0 }
   0xa   :  { %15 = vsyncpa [#allocation8], 0 }
   0xb   :  { %16 = vsyncpa [#allocation6], 0 }
   0xc   :  { %18 = vsyncpa [#allocation6 + $0x1], 0 }
   0xd   :  { %19 = vsyncpa [#allocation12], 0 }
   0xe   :  { %21 = vsyncpa [#allocation12 + $0x1], 0  ;;  %s2138_s21 = smov 0   ;;  %s2140_s22 = smov 0  }
   0xf   :  { %s2142_s23 = smov 0   ;;  %s2144_s24 = smov 0  }
  0x10   :  { %s2146_s25 = smov 0   ;;  %s2148_s26 = smov 0  }
  0x11   :  { %s2150_s27 = smov 0   ;;  %s2152_s28 = smov 0  }
  0x12   :  { %s2154_s29 = smov 0   ;;  %s2156_s30 = smov 0  }
  0x13   :  { %s2158_s7 = smov 0  }
  0x14 LB: > { %2615 = sst [smem:[#allocation17_spill]] %s2036_s21  ;;  %s1423_s8 = sadd.s32 4294967295, %s2076_s7   ;;  %s2076_s7 = sphi %s2158_s7, %s27_s7   ;;  %s2072_s30 = sphi %s2156_s30, %s2656_s30   ;;  %s2068_s29 = sphi %s2154_s29, %s2648_s29   ;;  %s2064_s28 = sphi %s2152_s28, %s2655_s28   ;;  %s2060_s27 = sphi %s2150_s27, %s2647_s27   ;;  %s2056_s26 = sphi %s2148_s26, %s2654_s26   ;;  %s2052_s25 = sphi %s2146_s25, %s2653_s25   ;;  %s2048_s24 = sphi %s2144_s24, %s2652_s24   ;;  %s2044_s23 = sphi %s2142_s23, %s2651_s23   ;;  %s2040_s22 = sphi %s2140_s22, %s2650_s22   ;;  %s2036_s21 = sphi %s2138_s21, %s2649_s21  }
  0x15   : > { %2616 = sst [smem:[#allocation18_spill]] %s2068_s29  ;;  %s1424_s9 = sadd.s32 4294967294, %s2076_s7  }
  0x16   : > { %p59_p0 = scmp.ne.s32.totalorder %s2052_s25, %s2048_s24  ;;  %p2194_p1 = scmp.eq.s32.totalorder %s1423_s8, 0 }
  0x17   : > { %p168_p2 = scmp.ne.s32.totalorder %s2044_s23, %s2040_s22  ;;  %p169_p4 = scmp.eq.s32.totalorder %s1423_s8, 3 }
  0x18   : > { %s2617_s10 = scalar_select %p2194_p1, 1, 0 }
  0x19   : > { %p2203_p3 = por %p2194_p1, %p59_p0  ;;  %p174_p5 = scmp.ne.s32.totalorder %s2040_s22, %s2036_s21 }
  0x1a   : > { %p175_p6 = scmp.eq.s32.totalorder %s1424_s9, 3  ;;  %p2209_p7 = por %p169_p4, %p168_p2 }
  0x1b   : > { %s2618_s12 = scalar_select %p2203_p3, 1, 0 }
  0x1c   : > { %s2619_s13 = scalar_select %p2209_p7, 1, 0 }
  0x1d   : > { %p1425_p8 = scmp.ge.s32.totalorder %s2076_s7, 1  ;;  %p2214_p9 = por %p175_p6, %p174_p5 }
  0x1e   : > { %p210_p10 = scmp.lt.s32.totalorder %s2076_s7, 5  ;;  %s2078_s16 = smov [#allocation7]  }
  0x1f   : > { %s2620_s14 = scalar_select %p2214_p9, 1, 0 }
  0x20   : > { %p2219_p11 = pnand %p1425_p8, %p210_p10  ;;  %s222_s17 = sshll.u32 %s2078_s16, 4  ;;  %s223_s17 = int_to_ptr.vmem [resolvable:$true] %s222_s17 }
  0x21   : > { %2621 = sst [smem:[#allocation19_spill]] %s2620_s14  ;;  %s2079_s19 = smov [#allocation9]  }
  0x22   : > { %s2622_s15 = scalar_select %p2219_p11, 1, 0 }
  0x23   : > { %p1642_p12 = pneg %p2219_p11  ;;  %s238_s20 = sshll.u32 %s2079_s19, 4  ;;  %s2231_s20 = int_to_ptr.vmem [resolvable:$true] %s238_s20 }
  0x24   : > { %s2624_s1 = sld [smem:[#allocation22_spill]] }
  0x25   : > { %p2227_p13 = pnand %p1642_p12, %p2194_p1 }
  0x27   : > { %p1834_p2 = pneg %p2227_p13 }
  0x2a   : > { %s1832_s9 = scalar_lea.hbm %s2624_s1, 512 }
  0x2b   : > { %p1833_p0 = scmp.ne.s32.totalorder %s2624_s1, %s1832_s9  ;;  %p1839_p6 = scmp.lt.u32.totalorder %s1832_s9, %s2624_s1 }
  0x2d   : > { %p1835_p4 = pnand %p1834_p2, %p1833_p0 }
  0x2f   : > { %p1836_p5 = pneg %p1835_p4 }
  0x31   : > { %p1841_p8 = pnand %p1839_p6, %p1836_p5 }
  0x33   : > { %1844 = shalt.err (!%p1841_p8)
}
  0x34   : > { %s1845_s19 = scalar_lea.vmem %s223_s17, 512  ;;  %p1853_p7 = scmp.lt.s32.totalorder %s223_s17, %s223_s17 }
  0x35   : > { %p1846_p10 = scmp.ne.s32.totalorder %s223_s17, %s1845_s19  ;;  %p1854_p1 = scmp.lt.s32.totalorder %s1845_s19, %s1845_s19 }
  0x37   : > { %p1848_p12 = pnand %p1846_p10, %p1834_p2  ;;  %p1855_p3 = por %p1854_p1, %p1853_p7 }
  0x39   : > { %p1849_p9 = pneg %p1848_p12 }
  0x3b   : > { %p1856_p11 = pnand %p1855_p3, %p1849_p9 }
  0x3d   : > { %1859 = shalt.err (!%p1856_p11)
}
  0x3e   : > { %s2603_s11 = smov 128   ;;  %s2604_s24 = smov 8  }
  0x3f   : > { %1645 = dma.hbm_to_vmem [thread:$0]  (!%p2227_p13), %s2624_s1, 512, %s223_s17, [#allocation8], %s2603_s11, %s2603_s11, %s2604_s24  }
  0x40   : > { %s2625_s3 = sld [smem:[#allocation24_spill]] }
  0x46   : > { %s1860_s16 = scalar_lea.hbm %s2625_s3, 512 }
  0x47   : > { %p1861_p1 = scmp.ne.s32.totalorder %s2625_s3, %s1860_s16  ;;  %p1867_p9 = scmp.lt.u32.totalorder %s1860_s16, %s2625_s3 }
  0x49   : > { %p1863_p3 = pnand %p1861_p1, %p1834_p2 }
  0x4b   : > { %p1864_p7 = pneg %p1863_p3 }
  0x4d   : > { %p1869_p11 = pnand %p1867_p9, %p1864_p7 }
  0x4f   : > { %1872 = shalt.err (!%p1869_p11)
}
  0x50   : > { %s1873_s17 = scalar_lea.vmem %s2231_s20, 512  ;;  %p1881_p6 = scmp.lt.s32.totalorder %s2231_s20, %s2231_s20 }
  0x51   : > { %p1874_p0 = scmp.ne.s32.totalorder %s2231_s20, %s1873_s17  ;;  %p1882_p8 = scmp.lt.s32.totalorder %s1873_s17, %s1873_s17 }
  0x53   : > { %p1876_p4 = pnand %p1874_p0, %p1834_p2  ;;  %p1883_p10 = por %p1882_p8, %p1881_p6 }
  0x55   : > { %p1877_p5 = pneg %p1876_p4 }
  0x57   : > { %p1884_p12 = pnand %p1883_p10, %p1877_p5 }
  0x59   : > { %1887 = shalt.err (!%p1884_p12)
}
  0x5a   : > { %1648 = dma.hbm_to_vmem [thread:$0]  (!%p2227_p13), %s2625_s3, 512, %s2231_s20, [#allocation8], %s2603_s11, %s2603_s11, %s2604_s24  }
  0x5b   : > { %s36_s6 = sadd.s32 1, %s2068_s29  ;;  %s39_s18 = sadd.s32 1, %s2072_s30 }
  0x5c   : > { %p37_p2 = scmp.ge.s32.totalorder %s36_s6, 2  ;;  %s46_s21 = sadd.s32 1, %s2056_s26 }
  0x5d   : > { %p53_p1 = scmp.ne.s32.totalorder %s2056_s26, %s2052_s25  ;;  %p54_p3 = scmp.eq.s32.totalorder %s2076_s7, 0 }
  0x5e   : > { %s2658_s6 = smov (%p37_p2, %s36_s6), 0  ;;  %s2660_s18 = smov (!%p37_p2, %s39_s18), %s2072_s30 }
  0x5f   : > { %2626 = sst [smem:[#allocation20_spill]] %s2658_s6  ;;  %p2295_p7 = por %p54_p3, %p53_p1 }
  0x60   : > { %s154_s8 = ssub.s32 %s2068_s29, %s2658_s6  ;;  %p41_p13 = scmp.ge.s32.totalorder %s2660_s18, 2 }
  0x61   : > { %p1662_p9 = scmp.lt.s32.totalorder %s2076_s7, 4  ;;  %s255_s20 = sand.u32 1, %s2056_s26  }
  0x62   : > { %s1472_s9 = sshll.u32 %s2072_s30, 8  ;;  %s2662_s18 = smov (%p41_p13, %s2660_s18), 0 }
  0x63   : > { %s1429_s16 = sshll.u32 %s255_s20, 4  ;;  %s43_s19 = ssub.s32 %s2072_s30, %s2662_s18 }
  0x64   : > { %p44_p11 = scmp.eq.s32.totalorder %s43_s19, 0  ;;  %s155_s17 = sor.u32 %s154_s8, %s43_s19 }
  0x65   : > { %p156_p0 = scmp.eq.s32.totalorder %s155_s17, 0  ;;  %s2628_s0 = sld [smem:[#allocation21_spill]] }
  0x66   : > { %s2314_s24 = scalar_select %p44_p11, %s2056_s26, %s46_s21  }
  0x67   : > { %s2629_s1 = sadd.s32 1, %s2044_s23  ;;  %s259_s6 = scalar_lea.vmem [#allocation4], %s1429_s16 }
  0x68   : > { %s2319_s3 = scalar_select %p156_p0, %s2044_s23, %s2629_s1  }
  0x69   : > { %s266_s29 = sshll.u32 %s259_s6, 4  ;;  %p2325_p4 = pnand %p1662_p9, %p2295_p7  ;;  %s2329_s29 = int_to_ptr.vmem [resolvable:$true] %s266_s29 }
  0x6b   : > { %s2311_s11 = scalar_lea.hbm %s2628_s0, %s1472_s9  ;;  %s2331_s9 = scalar_lea.sflag [#allocation5], %s255_s20 }
  0x6c   : > { %s1888_s21 = scalar_lea.hbm %s2311_s11, 256  ;;  %p1890_p6 = pneg %p2325_p4 }
  0x6d   : > { %p1889_p5 = scmp.ne.s32.totalorder %s2311_s11, %s1888_s21  ;;  %s1893_s14 = scalar_lea.hbm %s2628_s0, 512 }
  0x6e   : > { %p1894_p12 = scmp.lt.u32.totalorder %s2311_s11, %s2628_s0  ;;  %p1895_p2 = scmp.lt.u32.totalorder %s1893_s14, %s1888_s21 }
  0x6f   : > { %p1891_p8 = pnand %p1890_p6, %p1889_p5  ;;  %p1897_p3 = scmp.lt.u32.totalorder %s1888_s21, %s2311_s11 }
  0x70   : > { %p1896_p1 = por %p1895_p2, %p1894_p12 }
  0x71   : > { %p1892_p10 = pneg %p1891_p8 }
  0x72   : > { %p1898_p7 = por %p1897_p3, %p1896_p1 }
  0x74   : > { %p1899_p13 = pnand %p1898_p7, %p1892_p10 }
  0x76   : > { %1902 = shalt.err (!%p1899_p13)
}
  0x77   : > { %s1903_s20 = scalar_lea.vmem %s2329_s29, 256  ;;  %s2082_s17 = smov [#allocation4]  }
  0x78   : > { %p1904_p9 = scmp.ne.s32.totalorder %s2329_s29, %s1903_s20  ;;  %s1908_s4 = sshll.u32 %s2082_s17, 4  ;;  %s1909_s4 = int_to_ptr.vmem [resolvable:$false] %s1908_s4 }
  0x79   : > { %s1910_s5 = scalar_lea.vmem %s1909_s4, 512  ;;  %p1911_p5 = scmp.lt.s32.totalorder %s2329_s29, %s1909_s4 }
  0x7a   : > { %p1906_p11 = pnand %p1904_p9, %p1890_p6  ;;  %p1912_p8 = scmp.lt.s32.totalorder %s1910_s5, %s1903_s20 }
  0x7c   : > { %p1907_p0 = pneg %p1906_p11  ;;  %p1913_p12 = por %p1912_p8, %p1911_p5 }
  0x7e   : > { %p1914_p2 = pnand %p1913_p12, %p1907_p0 }
  0x80   : > { %1917 = shalt.err (!%p1914_p2)
}
  0x81   : > { %s2631_s21 = smov 8   ;;  %s2632_s1 = smov 128  }
  0x82   : > { %1652 = dma.hbm_to_vmem [thread:$0]  (!%p2325_p4), %s2311_s11, 256, %s2329_s29, %s2331_s9, %s2632_s1, %s2632_s1, %s2631_s21  }
  0x83   : > { %p2633_p6 = scmp.ne.s32.totalorder %s2622_s15, 0 }
  0x84   : > { %s280_s6 = sand.u32 (!%p2633_p6), 1, %s2052_s25   ;;  %p2634_p10 = scmp.ne.s32.totalorder (!%p2633_p6), %s2618_s12, 0 }
  0x85   : > { %278 = sbr.rel (%p2633_p6) target bundleno = 2836 (0xb14), region = 40  ;;  %s1433_s14 = sshll.u32 (!%p2633_p6), %s280_s6, 4 }
  0x86   : > { %s281_s16 = scalar_lea.sflag (!%p2633_p6), [#allocation5], %s280_s6  ;;  %s284_s19 = scalar_lea.vmem (!%p2633_p6), [#allocation4], %s1433_s14 }
  0x8c   : > { %2019 = dma.done.wait (%p2634_p10), %s281_s16, 256  }
  0x8d   : > { %2021 = vsyncadd (%p2634_p10), %s281_s16, 4294967040  ;;  %p2635_p1 = scmp.ne.s32.totalorder %s2617_s10, 0 }
  0x8f   : > { %2023 = dma.done.wait (%p2635_p1), [#allocation8], 1024  }
  0x90   : > { %2025 = vsyncadd (%p2635_p1), [#allocation8], 4294966272  ;;  %s2374_s29 = sand.u32 1, %s2040_s22   ;;  %p1438_p4 = scmp.ne.s32.totalorder %s2060_s27, 0 }
  0x91   : > { %s1436_s15 = sshll.u32 %s2374_s29, 3  ;;  %s1437_s11 = sshll.u32 %s2374_s29, 5  ;;  %v332_v0 = vld [vmem:[#allocation7] sm:$0xff] (!%p1438_p4)  ;;  %v333_v1 = vld [vmem:[#allocation7 + $0x8] sm:$0xff] (!%p1438_p4)  ;;  %v334_v2 = vld [vmem:[#allocation7 + $0x10] sm:$0xff] (!%p1438_p4)  ;;  %vm343_vm0 = vcmask (!%p1438_p4), 261120  }
  0x92   : > { %s2378_s8 = scalar_lea.vmem [#allocation10], %s1436_s15  ;;  %s2380_s9 = scalar_lea.vmem [#allocation11], %s1437_s11  ;;  %v1586_v3 = vpack.c.bf16 (!%p1438_p4), %v333_v1, %v332_v0  ;;  %v335_v4 = vld [vmem:[#allocation7 + $0x18] sm:$0xff] (!%p1438_p4)  ;;  %v330_v5 = vld [vmem:[%s284_s19] sm:$0xff] (!%p1438_p4)  ;;  %vm425_vm1 = vcmask (!%p1438_p4), 785408  }
  0x93   : > { %329 = sbr.rel (%p1438_p4) target bundleno = 372 (0x174), region = 56  ;;  %v1590_v6 = vpack.c.bf16 (!%p1438_p4), %v335_v4, %v334_v2  ;;  %1516 = vmatprep.mubr.msk.f32.mxu0 (!%p1438_p4), %vm343_vm0, %v330_v5  ;;  %v331_v7 = vld [vmem:[%s284_s19 + $0x8] sm:$0xff] (!%p1438_p4)  ;;  %s2636_s2 = sld [smem:[#allocation23_spill]] (!%p1438_p4) }
  0x94   : > { %1587 = vmatprep.subr.bf16.mxu0 (!%p1438_p4), %v1586_v3 }
  0x95   : > { %1589 = vmatpush3.bf16.msra.mxu0 (!%p1438_p4), %v1586_v3 }
  0x96   : > { %1591 = vmatprep.subr.bf16.mxu0 (!%p1438_p4), %v1590_v6 }
  0x99   : > { %1593 = vmatpush3.bf16.msra.mxu0 (!%p1438_p4), %v1590_v6  ;;  %v1439_v8 = vld [vmem:[%s2636_s2] ss:$0 sm:$0xff] (!%p1438_p4) }
  0x9c   : > { %1517 = vmatmul.mubr.msk.f32.vlgmr.msra.gmra.mrb[0].mxu0 %vm343_vm0, %v331_v7 }
 0x16f   : > { %v1518_v9 = vpop.f32.mrb[0].mxu0 }
 0x170   : > { %v422_v10 = vadd.f32 %v1518_v9, %v1439_v8  ;;  %v416_v11 = vpop.f32.mrb[1].mxu0 }
 0x171   : > { %v417_v12 = vadd.f32 %v1439_v8, %v416_v11 }
 0x172   : > { %427 = vst.msk [vmem:[#allocation2 + $0x8] sm:$0xff] %vm425_vm1, %v422_v10 }
 0x173   : > { %426 = vst.msk [vmem:[#allocation2] sm:$0xff] %vm425_vm1, %v417_v12 }
 0x174 PF: > { %v2083_v16 = vmov 0.0|0.0   ;;  %vm2084_vm2 = vmmov 0   ;;  %v2085_v17 = vmov 0.0   ;;  %s2086_s20 = smov 96   ;;  %vm439_vm3 = vcmask 64512   ;;  %s1442_s17 = sshll.u32 %s2060_s27, 3 }
 0x175   : > { %1594 = vmatprep.subr.bf16.mxu0 %v2083_v16  ;;  %1598 = vmatprep.subr.bf16.mxu1 %v2083_v16  ;;  %vm2397_vm4 = vmpackc.low %vm439_vm3, %vm439_vm3  ;;  %s429_s4 = scalar_lea.vmem [#allocation2], %s1442_s17  ;;  %s2087_s5 = smov 64   ;;  %vm517_vm5 = vcmask 130048   ;;  %vm1158_vm6 = vcmask 261248   ;;  %vm1172_vm7 = vcmask 261120  }
 0x176   : > { %1523 = vmatprep.mubr.msk.f32.mxu0 %vm2084_vm2, %v2085_v17  ;;  %1530 = vmatprep.mubr.msk.f32.mxu1 %vm2084_vm2, %v2085_v17  ;;  %s2088_s21 = smov 88   ;;  %s2089_s1 = smov 120  }
 0x177   : > { %s2090_s6 = smov 80   ;;  %s2091_s14 = smov 112  }
 0x178   : > { %s2092_s16 = smov 104   ;;  %s2093_s19 = smov 56  }
 0x179   : > { %v432_v14 = vld [vmem:[#allocation2 + $0x8] sm:$0xff]  ;;  %s2094_s15 = smov 48   ;;  %s2095_s11 = smov 72  }
 0x17a   : > { %v431_v13 = vld [vmem:[#allocation2] sm:$0xff]  ;;  %s2096_s10 = smov 40   ;;  %s2097_s12 = smov 8  }
 0x17b   : > { %v2386_v15 = vpack.i.bf16 %v432_v14, %v431_v13  ;;  %v2405_v23 = vld [vmem:[%s429_s4] sm:$0xff]  ;;  %s1468_s17 = sshll.u32 %s2064_s28, 3  ;;  %p2640_p7 = scmp.ne.s32.totalorder %s2619_s13, 0 }
 0x17c   : > { %s1279_s4 = sadd.s32 %s2060_s27, %s1468_s17 }
 0x17d   : > { %1777 = vrot.lane.b32.xlu0 %v2386_v15, %s2086_s20  ;;  %1782 = vrot.lane.b32.xlu1 %v2386_v15, %s2087_s5  ;;  %s2098_s20 = smov 16   ;;  %s1469_s5 = sshll.u32 %s1279_s4, 7 }
 0x181   : > { %1787 = vrot.lane.b32.xlu1 %v2386_v15, %s2088_s21  ;;  %s1282_s21 = sshll.u32 %s2380_s9, 4  ;;  %s2486_s21 = int_to_ptr.vmem [resolvable:$true] %s1282_s21 }
 0x185   : > { %611 = vrot.lane.b32.xlu1 %v2405_v23, %s2089_s1 }
 0x1ef   : > { %v1778_v18 = vpop.permute.xlu0 %1777  ;;  %v1783_v27 = vpop.permute.xlu1 %1782 }
 0x1f0   : > { %v1780_v19 = vunpack.i.h.bf16 %v1778_v18  ;;  %v1779_v20 = vunpack.i.l.bf16 %v1778_v18  ;;  %v1785_v28 = vunpack.i.h.bf16 %v1783_v27  ;;  %v1784_v29 = vunpack.i.l.bf16 %v1783_v27 }
 0x1f2   : > { %v1595_v22 = vpack.c.bf16 %v1780_v19, %v1779_v20  ;;  %v1599_v30 = vpack.c.bf16 %v1785_v28, %v1784_v29 }
 0x1f3   : > { %v1788_v36 = vpop.permute.xlu1 %1787 }
 0x1f4   : > { %1597 = vmatpush3.bf16.xpose.msk.msra.mxu0 %vm2397_vm4, %v1595_v22  ;;  %1600 = vmatpush3.bf16.msra.mxu1 %v1599_v30  ;;  %v1790_v43 = vunpack.i.h.bf16 %v1788_v36  ;;  %v1789_v44 = vunpack.i.l.bf16 %v1788_v36 }
 0x1f5   : > { %1608 = vmatprep.subr.bf16.mxu0 %v2083_v16  ;;  %1601 = vmatprep.subr.bf16.mxu1 %v2083_v16 }
 0x1f6   : > { %v1602_v47 = vpack.c.bf16 %v1790_v43, %v1789_v44 }
 0x1f7   : > { %v612_v37 = vpop.permute.xlu1 %611 }
 0x1fb   : > { %1524 = vmatmul.mubr.msk.f32.vlgmr.msra.gmra.mrb[0].mxu0 %vm439_vm3, %v2405_v23 }
 0x1fc   : > { %1551 = vmatprep.mubr.msk.f32.mxu0 %vm2084_vm2, %v2085_v17 }
 0x2ce   : > { %v513_v24 = vpop.f32.mrb[0].mxu0 }
 0x2cf   : > { %v1525_v25 = vpop.f32.mrb[1].mxu0  ;;  %v518_v26 = vsel %vm517_vm5, %v513_v24, -inf }
 0x2d0   : > { %519 = vmax.xlane.f32.xlu0 %v518_v26 }
 0x35d   : > { %v520_v31 = vpop.xlane.xlu0 %519 }
 0x35e   : > { %v521_v32 = vsub.f32 %v513_v24, %v520_v31 }
 0x360   : > { %v522_v33 = vmul.f32 1.442695, %v521_v32 }
 0x362   : > { %1816 = vpow2.f32 %v522_v33 }
 0x36c   : > { %v1817_v34 = vpop.eup %1816 }
 0x36d   : > { %v524_v35 = vsel %vm517_vm5, %v1817_v34, 0.0 }
 0x36e   : > { %525 = vadd.xlane.f32.xlu1 %v524_v35 }
 0x37f   : > { %1792 = vrot.lane.b32.xlu1 %v2386_v15, %s2090_s6 }
 0x383   : > { %795 = vrot.lane.b32.xlu1 %v2405_v23, %s2091_s14  ;;  %s2639_s14 = sld [smem:[#allocation27_spill]] }
 0x3fb   : > { %v526_v38 = vpop.xlane.xlu1 %525 }
 0x3fc   : > { %1818 = vrcp.f32 %v526_v38 }
 0x3ff   : > { %v1793_v39 = vpop.permute.xlu1 %1792 }
 0x400   : > { %v1795_v40 = vunpack.i.h.bf16 %v1793_v39  ;;  %v1794_v41 = vunpack.i.l.bf16 %v1793_v39 }
 0x402   : > { %v1609_v42 = vpack.c.bf16 %v1795_v40, %v1794_v41 }
 0x403   : > { %v796_v48 = vpop.permute.xlu1 %795 }
 0x404   : > { %1611 = vmatpush3.bf16.xpose.msk.msra.mxu0 %vm2397_vm4, %v1609_v42 }
 0x405   : > { %1619 = vmatprep.subr.bf16.mxu0 %v2083_v16 }
 0x406   : > { %v1819_v45 = vpop.eup %1818 }
 0x407   : > { %v528_v46 = vmul.f32 %v1819_v45, %v1817_v34 }
 0x409   : > { %529 = vst.msk [vmem:[%s2380_s9] sm:$0xff] %vm517_vm5, %v528_v46  ;;  %1531 = vmatmul.mubr.msk.f32.vlgmr.msra.gmra.mrb[0].mxu1 %vm517_vm5, %v528_v46 }
 0x40a   : > { %1604 = vmatpush3.bf16.xpose.msk.msra.mxu1 %vm2397_vm4, %v1602_v47  ;;  %1537 = vmatprep.mubr.msk.f32.mxu1 %vm2084_vm2, %v2085_v17  ;;  %v1161_v47 = vld [vmem:[#allocation9] sm:$0xff] }
 0x40b   : > { %1552 = vmatmul.mubr.msk.f32.vlgmr.msra.gmra.mrb[2].mxu0 %vm439_vm3, %v796_v48  ;;  %1605 = vmatprep.subr.bf16.mxu1 %v2083_v16  ;;  %v1162_v48 = vld [vmem:[#allocation9 + $0x8] sm:$0xff] }
 0x40c   : > { %1572 = vmatprep.mubr.msk.f32.mxu0 %vm2084_vm2, %v2085_v17 }
 0x411   : > { %1538 = vmatmul.mubr.msk.f32.vlgmr.msra.gmra.mrb[2].mxu1 %vm439_vm3, %v612_v37 }
 0x412   : > { %1544 = vmatprep.mubr.msk.f32.mxu1 %vm2084_vm2, %v2085_v17 }
 0x4dc   : > { %v2436_v49 = vpop.f32.mrb[0].mxu1 }
 0x4dd   : > { %v1532_v50 = vpop.f32.mrb[1].mxu1 }
 0x4de   : > { %v875_v51 = vpop.f32.mrb[2].mxu0  ;;  %v1163_v50 = vld [vmem:[#allocation9 + $0x10] sm:$0xff] }
 0x4df   : > { %v1553_v52 = vpop.f32.mrb[3].mxu0  ;;  %v879_v53 = vsel %vm517_vm5, %v875_v51, -inf }
 0x4e0   : > { %880 = vmax.xlane.f32.xlu1 %v879_v53 }
 0x4e4   : > { %v691_v54 = vpop.f32.mrb[2].mxu1 }
 0x4e5   : > { %v1539_v55 = vpop.f32.mrb[3].mxu1  ;;  %v695_v56 = vsel %vm517_vm5, %v691_v54, -inf }
 0x4e6   : > { %696 = vmax.xlane.f32.xlu0 %v695_v56 }
 0x4f1   : > { %973 = vrot.lane.b32.xlu1 %v2405_v23, %s2092_s16  ;;  %s2484_s16 = scalar_lea.hbm %s2639_s14, %s1469_s5 }
 0x56d   : > { %v881_v57 = vpop.xlane.xlu1 %880 }
 0x56e   : > { %v882_v58 = vsub.f32 %v875_v51, %v881_v57  ;;  %v1164_v51 = vld [vmem:[#allocation9 + $0x18] sm:$0xff] }
 0x56f   : > { %v1626_v52 = vpack.c.bf16 %v1164_v51, %v1163_v50 }
 0x570   : > { %v883_v59 = vmul.f32 1.442695, %v882_v58 }
 0x571   : > { %v974_v25 = vpop.permute.xlu1 %973 }
 0x572   : > { %1820 = vpow2.f32 %v883_v59 }
 0x573   : > { %v697_v62 = vpop.xlane.xlu0 %696 }
 0x574   : > { %v698_v63 = vsub.f32 %v691_v54, %v697_v62 }
 0x576   : > { %v699_v0 = vmul.f32 1.442695, %v698_v63 }
 0x578   : > { %1822 = vpow2.f32 %v699_v0 }
 0x57c   : > { %v1821_v60 = vpop.eup %1820 }
 0x57d   : > { %v885_v61 = vsel %vm517_vm5, %v1821_v60, 0.0 }
 0x57e   : > { %886 = vadd.xlane.f32.xlu0 %v885_v61 }
 0x582   : > { %v1823_v1 = vpop.eup %1822 }
 0x583   : > { %v701_v2 = vsel %vm517_vm5, %v1823_v1, 0.0 }
 0x594   : > { %1797 = vrot.lane.b32.xlu0 %v2386_v15, %s2093_s19  ;;  %s1253_s19 = scalar_lea.sflag [#allocation12], %s2374_s29 }
 0x5b3   : > { %702 = vadd.xlane.f32.xlu0 %v701_v2 }
 0x5c9   : > { %1802 = vrot.lane.b32.xlu0 %v2386_v15, %s2094_s15  ;;  %s1918_s15 = scalar_lea.vmem %s2486_s21, 512 }
 0x5ca   : > { %p1919_p3 = scmp.ne.s32.totalorder %s2486_s21, %s1918_s15 }
 0x5cc   : > { %p1920_p13 = pnand %p1919_p3, %p2640_p7 }
 0x5cd   : > { %1807 = vrot.lane.b32.xlu0 %v2386_v15, %s2095_s11  ;;  %s2099_s11 = smov [#allocation11]  }
 0x5ce   : > { %p1921_p9 = pneg %p1920_p13 }
 0x60b   : > { %v887_v3 = vpop.xlane.xlu0 %886 }
 0x60c   : > { %1824 = vrcp.f32 %v887_v3 }
 0x60f   : > { %v1798_v4 = vpop.permute.xlu0 %1797 }
 0x610   : > { %v1800_v5 = vunpack.i.h.bf16 %v1798_v4  ;;  %v1799_v6 = vunpack.i.l.bf16 %v1798_v4 }
 0x612   : > { %v1606_v7 = vpack.c.bf16 %v1800_v5, %v1799_v6 }
 0x614   : > { %1607 = vmatpush3.bf16.msra.mxu1 %v1606_v7 }
 0x615   : > { %1612 = vmatprep.subr.bf16.mxu1 %v2083_v16 }
 0x616   : > { %v1825_v8 = vpop.eup %1824 }
 0x617   : > { %v889_v9 = vmul.f32 %v1825_v8, %v1821_v60 }
 0x619   : > { %1455 = vst.msk [vmem:[%s2380_s9 + $0x10] sm:$0xff] %vm517_vm5, %v889_v9 }
 0x640   : > { %v703_v10 = vpop.xlane.xlu0 %702 }
 0x641   : > { %1826 = vrcp.f32 %v703_v10 }
 0x644   : > { %v1803_v11 = vpop.permute.xlu0 %1802 }
 0x645   : > { %v1805_v12 = vunpack.i.h.bf16 %v1803_v11  ;;  %v1804_v13 = vunpack.i.l.bf16 %v1803_v11 }
 0x647   : > { %v1613_v18 = vpack.c.bf16 %v1805_v12, %v1804_v13 }
 0x648   : > { %v1808_v20 = vpop.permute.xlu0 %1807 }
 0x649   : > { %v1810_v22 = vunpack.i.h.bf16 %v1808_v20  ;;  %v1809_v23 = vunpack.i.l.bf16 %v1808_v20 }
 0x64b   : > { %v1827_v14 = vpop.eup %1826  ;;  %v1616_v24 = vpack.c.bf16 %v1810_v22, %v1809_v23 }
 0x64c   : > { %v705_v19 = vmul.f32 %v1827_v14, %v1823_v1 }
 0x64e   : > { %1450 = vst.msk [vmem:[%s2380_s9 + $0x8] sm:$0xff] %vm517_vm5, %v705_v19  ;;  %1545 = vmatmul.mubr.msk.f32.vlgmr.msra.gmra.mrb[4].mxu1 %vm517_vm5, %v705_v19 }
 0x64f   : > { %1614 = vmatpush3.bf16.msra.mxu1 %v1613_v18  ;;  %1558 = vmatprep.mubr.msk.f32.mxu1 %vm2084_vm2, %v2085_v17 }
 0x650   : > { %1615 = vmatprep.subr.bf16.mxu1 %v2083_v16 }
 0x652   : > { %1559 = vmatmul.mubr.msk.f32.vlgmr.msra.gmra.mrb[6].mxu1 %vm517_vm5, %v889_v9 }
 0x653   : > { %1565 = vmatprep.mubr.msk.f32.mxu1 %vm2084_vm2, %v2085_v17 }
 0x658   : > { %1618 = vmatpush3.bf16.xpose.msk.msra.mxu1 %vm2397_vm4, %v1616_v24 }
 0x65f   : > { %1566 = vmatmul.mubr.msk.f32.vlgmr.msra.gmra.mrb[8].mxu1 %vm439_vm3, %v974_v25 }
 0x721   : > { %v783_v26 = vpop.f32.mrb[4].mxu1 }
 0x722   : > { %v1546_v27 = vpop.f32.mrb[5].mxu1 }
 0x725   : > { %v967_v28 = vpop.f32.mrb[6].mxu1 }
 0x726   : > { %v1560_v29 = vpop.f32.mrb[7].mxu1 }
 0x732   : > { %v1053_v30 = vpop.f32.mrb[8].mxu1 }
 0x733   : > { %v1567_v31 = vpop.f32.mrb[9].mxu1  ;;  %v1057_v32 = vsel %vm517_vm5, %v1053_v30, -inf }
 0x734   : > { %1058 = vmax.xlane.f32.xlu0 %v1057_v32 }
 0x74a   : > { %1812 = vrot.lane.b32.xlu0 %v2386_v15, %s2096_s10  ;;  %s1922_s10 = sshll.u32 %s2099_s11, 4  ;;  %s1923_s10 = int_to_ptr.vmem [resolvable:$false] %s1922_s10 }
 0x74b   : > { %p1925_p11 = scmp.lt.s32.totalorder %s2486_s21, %s1923_s10 }
 0x74e   : > { %788 = vrot.lane.b32.xlu0 %v783_v26, %s2097_s12 }
 0x7c1   : > { %v1059_v21 = vpop.xlane.xlu0 %1058 }
 0x7c2   : > { %v1060_v33 = vsub.f32 %v1053_v30, %v1059_v21 }
 0x7c4   : > { %v1061_v34 = vmul.f32 1.442695, %v1060_v33 }
 0x7c5   : > { %v1813_v35 = vpop.permute.xlu0 %1812 }
 0x7c6   : > { %1828 = vpow2.f32 %v1061_v34  ;;  %v1815_v36 = vunpack.i.h.bf16 %v1813_v35  ;;  %v1814_v37 = vunpack.i.l.bf16 %v1813_v35 }
 0x7c8   : > { %v1620_v38 = vpack.c.bf16 %v1815_v36, %v1814_v37 }
 0x7c9   : > { %v789_v39 = vpop.permute.xlu0 %788 }
 0x7ca   : > { %v791_v40 = vsel %vm439_vm3, %v2436_v49, %v789_v39  ;;  %1621 = vmatpush3.bf16.msra.mxu0 %v1620_v38  ;;  %v1623_v49 = vpack.c.bf16 %v1162_v48, %v1161_v47 }
 0x7cb   : > { %792 = vst.msk [vmem:[#allocation3] sm:$0xff] %vm517_vm5, %v791_v40  ;;  %1622 = vmatprep.subr.bf16.mxu0 %v2083_v16 }
 0x7d0   : > { %v1829_v15 = vpop.eup %1828 }
 0x7d1   : > { %v1063_v41 = vsel %vm517_vm5, %v1829_v15, 0.0 }
 0x7d2   : > { %1064 = vadd.xlane.f32.xlu1 %v1063_v41 }
 0x85f   : > { %v1065_v42 = vpop.xlane.xlu1 %1064 }
 0x860   : > { %1830 = vrcp.f32 %v1065_v42 }
 0x86a   : > { %v1831_v43 = vpop.eup %1830 }
 0x86b   : > { %v1067_v44 = vmul.f32 %v1831_v43, %v1829_v15 }
 0x86d   : > { %1460 = vst.msk [vmem:[%s2380_s9 + $0x18] sm:$0xff] %vm517_vm5, %v1067_v44  ;;  %1573 = vmatmul.mubr.msk.f32.vlgmr.msra.gmra.mrb[4].mxu0 %vm517_vm5, %v1067_v44  ;;  %s1924_s9 = scalar_lea.vmem %s1923_s10, 1024 }
 0x86e   : > { %1583 = vmatprep.mubr.msk.f32.mxu0 %vm2084_vm2, %v2085_v17  ;;  %1624 = vmatpush3.bf16.msra.mxu0 %v1623_v49  ;;  %p1926_p0 = scmp.lt.s32.totalorder %s1924_s9, %s1918_s15 }
 0x86f   : > { %1625 = vmatprep.subr.bf16.mxu0 %v2083_v16 }
 0x870   : > { %p1927_p5 = por %p1926_p0, %p1925_p11 }
 0x872   : > { %1627 = vmatpush3.bf16.msra.mxu0 %v1626_v52  ;;  %p1928_p8 = pnand %p1927_p5, %p1921_p9 }
 0x940   : > { %v1145_v45 = vpop.f32.mrb[4].mxu0 }
 0x941   : > { %1150 = vrot.lane.b32.xlu1 %v1145_v45, %s2097_s12  ;;  %v1574_v46 = vpop.f32.mrb[5].mxu0 }
 0x9b3   : > { %v1151_v53 = vpop.permute.xlu1 %1150 }
 0x9b4   : > { %v1153_v17 = vsel %vm439_vm3, %v967_v28, %v1151_v53 }
 0x9b5   : > { %1155 = vrot.lane.b32.xlu0 %v1153_v17, %s2098_s20 }
 0xa27   : > { %v1156_v54 = vpop.permute.xlu0 %1155 }
 0xa28   : > { %1159 = vst.msk [vmem:[#allocation3] sm:$0xff] %vm1158_vm6, %v1156_v54 }
 0xa2f   : > { %v1160_v55 = vld [vmem:[#allocation3] sm:$0xff] }
 0xa30   : > { %1584 = vmatmul.mubr.msk.f32.vlgmr.msra.gmra.mrb[6].mxu0 %vm1172_vm7, %v1160_v55 }
 0xa31   : > { %1931 = shalt.err (!%p1928_p8)
}
 0xa32   : > { %s1932_s20 = scalar_lea.hbm %s2484_s16, 512  ;;  %s1936_s5 = scalar_lea.hbm %s2639_s14, 2048 }
 0xa33   : > { %p1933_p12 = scmp.ne.s32.totalorder %s2484_s16, %s1932_s20  ;;  %p1937_p10 = scmp.lt.u32.totalorder %s2484_s16, %s2639_s14 }
 0xa34   : > { %p1938_p1 = scmp.lt.u32.totalorder %s1936_s5, %s1932_s20  ;;  %p1940_p3 = scmp.lt.u32.totalorder %s1932_s20, %s2484_s16 }
 0xa35   : > { %p1934_p2 = pnand %p1933_p12, %p2640_p7 }
 0xa36   : > { %p1939_p4 = por %p1938_p1, %p1937_p10 }
 0xa37   : > { %p1935_p6 = pneg %p1934_p2 }
 0xa38   : > { %p1941_p13 = por %p1940_p3, %p1939_p4 }
 0xa3a   : > { %p1942_p9 = pnand %p1941_p13, %p1935_p6 }
 0xa3c   : > { %1945 = shalt.err (!%p1942_p9)
}
 0xa3d   : > { %s2100_s15 = smov 128   ;;  %s2101_s11 = smov 256  }
 0xa3e   : > { %1639 = dma.vmem_to_hbm [thread:$0]  (%p2640_p7), %s2486_s21, 512, %s2484_s16, %s1253_s19, %s2100_s15, %s2101_s11, %s2097_s12  }
 0xa3f   : > { %s1466_s10 = sshll.u32 %s2064_s28, 1  ;;  %s2641_s4 = sld [smem:[#allocation25_spill]] }
 0xa40   : > { %s1264_s9 = sadd.s32 %s2060_s27, %s1466_s10  ;;  %s1268_s1 = sshll.u32 %s2378_s8, 4  ;;  %s2524_s1 = int_to_ptr.vmem [resolvable:$true] %s1268_s1 }
 0xa41   : > { %s1467_s5 = sshll.u32 %s1264_s9, 7  ;;  %s2642_s2 = sld [smem:[#allocation26_spill]] }
 0xa42   : > { %s1248_s27 = scalar_lea.sflag [#allocation6], %s2374_s29  ;;  %s1946_s28 = scalar_lea.vmem %s2524_s1, 128 }
 0xa43   : > { %p1947_p11 = scmp.ne.s32.totalorder %s2524_s1, %s1946_s28  ;;  %s2102_s12 = smov [#allocation10]  }
 0xa44   : > { %s1950_s21 = sshll.u32 %s2102_s12, 4  ;;  %s1951_s21 = int_to_ptr.vmem [resolvable:$false] %s1950_s21 }
 0xa45   : > { %v1462_v16 = vld [vmem:[%s2641_s4] ss:$0 sm:$0xff]  ;;  %p1948_p0 = pnand %p1947_p11, %p2640_p7  ;;  %s1952_s16 = scalar_lea.vmem %s1951_s21, 256 }
 0xa46   : > { %p1953_p8 = scmp.lt.s32.totalorder %s2524_s1, %s1951_s21  ;;  %p1954_p12 = scmp.lt.s32.totalorder %s1952_s16, %s1946_s28 }
 0xa47   : > { %s2522_s14 = scalar_lea.hbm %s2642_s2, %s1467_s5  ;;  %p1949_p5 = pneg %p1948_p0 }
 0xa48   : > { %p1955_p2 = por %p1954_p12, %p1953_p8 }
 0xa4a   : > { %p1956_p6 = pnand %p1955_p2, %p1949_p5 }
 0xb03   : > { %v1242_v56 = vpop.f32.mrb[6].mxu0 }
 0xb04   : > { %v1243_v57 = vadd.f32 %v1462_v16, %v1242_v56  ;;  %v1585_v58 = vpop.f32.mrb[7].mxu0 }
 0xb06   : > { %1246 = vst.msk [vmem:[%s2378_s8] sm:$0xff] %vm1172_vm7, %v1243_v57 }
 0xb07   : > { %1959 = shalt.err (!%p1956_p6)
}
 0xb08   : > { %s1960_s0 = scalar_lea.hbm %s2522_s14, 128  ;;  %s1964_s19 = scalar_lea.hbm %s2642_s2, 512 }
 0xb09   : > { %p1961_p10 = scmp.ne.s32.totalorder %s2522_s14, %s1960_s0  ;;  %p1965_p3 = scmp.lt.u32.totalorder %s2522_s14, %s2642_s2 }
 0xb0a   : > { %p1966_p13 = scmp.lt.u32.totalorder %s1964_s19, %s1960_s0  ;;  %p1968_p11 = scmp.lt.u32.totalorder %s1960_s0, %s2522_s14 }
 0xb0b   : > { %p1962_p1 = pnand %p1961_p10, %p2640_p7 }
 0xb0c   : > { %p1967_p9 = por %p1966_p13, %p1965_p3 }
 0xb0d   : > { %p1963_p4 = pneg %p1962_p1 }
 0xb0e   : > { %p1969_p0 = por %p1968_p11, %p1967_p9 }
 0xb10   : > { %p1970_p5 = pnand %p1969_p0, %p1963_p4 }
 0xb12   : > { %1973 = shalt.err (!%p1970_p5)
}
 0xb13   : > { %1638 = dma.vmem_to_hbm [thread:$0]  (%p2640_p7), %s2524_s1, 128, %s2522_s14, %s1248_s27  }
 0xb14 PF: > { %s2643_s10 = sld [smem:[#allocation17_spill]]  ;;  %s2644_s9 = sld [smem:[#allocation19_spill]] }
 0xb15   : > { %p1665_p8 = scmp.ge.s32.totalorder %s2076_s7, 2 }
 0xb1a   : > { %s1297_s20 = sand.u32 1, %s2643_s10   ;;  %p2645_p12 = scmp.ne.s32.totalorder %s2644_s9, 0 }
 0xb1b   : > { %s1298_s17 = scalar_lea.sflag [#allocation6], %s1297_s20 }
 0xb1c   : > { %p1654_p2 = pnand %p1665_p8, %p2645_p12 }
 0xb1e   : > { %2027 = dma.done.wait (!%p1654_p2), %s1298_s17, 128  }
 0xb1f   : > { %2029 = vsyncadd (!%p1654_p2), %s1298_s17, 4294967168  ;;  %s1307_s4 = scalar_lea.sflag [#allocation12], %s1297_s20 }
 0xb20   : > { %2031 = dma.done.wait (!%p1654_p2), %s1307_s4, 512  }
 0xb21   : > { %2033 = vsyncadd (!%p1654_p2), %s1307_s4, 4294966784  ;;  %s27_s7 = sadd.s32 1, %s2076_s7   ;;  %s2646_s13 = smov %s2314_s24 }
 0xb22   : > { %p24_p6 = scmp.ge.s32.totalorder %s27_s7, 6   ;;  %s2647_s27 = sld [smem:[#allocation18_spill]] }
 0xb23   : > { %s2648_s29 = sld [smem:[#allocation20_spill]]  ;;  %s2649_s21 = smov %s2040_s22 }
 0xb24   : > { %s2650_s22 = smov %s2044_s23  ;;  %s2651_s23 = smov %s2319_s3 }
 0xb25   : > { %s2652_s24 = smov %s2052_s25  ;;  %s2653_s25 = smov %s2056_s26 }
 0xb26   : > { %s2654_s26 = smov %s2646_s13  ;;  %s2655_s28 = smov %s2072_s30 }
 0xb27   : > { %s2656_s30 = smov %s2662_s18  ;;  %26 = sbr.rel (!%p24_p6) target bundleno = 20 (0x14), region = 118 }
 0xb2e   :  { %1312 = vsyncpa [#allocation5], 1 }
 0xb2f   :  { %1314 = vsyncpa [#allocation5 + $0x1], 1 }
 0xb30   :  { %1315 = vsyncpa [#allocation8], 1 }
 0xb31   :  { %1316 = vsyncpa [#allocation6], 1 }
 0xb32   :  { %1318 = vsyncpa [#allocation6 + $0x1], 1 }
 0xb33   :  { %1319 = vsyncpa [#allocation12], 1 }
 0xb34   :  { %1321 = vsyncpa [#allocation12 + $0x1], 1 }

// kernel: tpu_custom_call.1
= control target key start
LH: loop header
LB: loop body
LE: loop exit
PB: predicated region body
PF: predicated region fallthrough
CT: control target
= control target key end

     0   :  { %s2587_s0 = inlined_call_operand.hbm [shape: f32[2,16,32], index: 0, kind: input, shape index: {}]   ;;  %s2588_s1 = inlined_call_operand.hbm [shape: f32[32,96], index: 1, kind: input, shape index: {}]   ;;  %s2589_s2 = inlined_call_operand.vmem [shape: f32[1,96], index: 2, kind: input, shape index: {}]   ;;  %s2590_s3 = inlined_call_operand.hbm [shape: f32[32,32], index: 3, kind: input, shape index: {}]   ;;  %s2591_s4 = inlined_call_operand.vmem [shape: f32[1,32], index: 4, kind: input, shape index: {}]   ;;  %s2592_s5 = inlined_call_operand.hbm [shape: f32[2,16,32], index: 5, kind: output, shape index: {0}]   ;;  %s2593_s6 = inlined_call_operand.hbm [shape: f32[2,4,16,16], index: 6, kind: output, shape index: {1}]  }
   0x1   :  { %2608 = sst [smem:[#allocation21_spill]] %s2587_s0 }
   0x2   :  { %2609 = sst [smem:[#allocation22_spill]] %s2588_s1 }
   0x3   :  { %2610 = sst [smem:[#allocation23_spill]] %s2589_s2 }
   0x4   :  { %2611 = sst [smem:[#allocation24_spill]] %s2590_s3 }
   0x5   :  { %2612 = sst [smem:[#allocation25_spill]] %s2591_s4 }
   0x6   :  { %2613 = sst [smem:[#allocation26_spill]] %s2592_s5 }
   0x7   :  { %2614 = sst [smem:[#allocation27_spill]] %s2593_s6 }
   0x8   :  { %12 = vsyncpa [#allocation5], 0 }
   0x9   :  { %14 = vsyncpa [#allocation5 + $0x1], 0 }
   0xa   :  { %15 = vsyncpa [#allocation8], 0 }
   0xb   :  { %16 = vsyncpa [#allocation6], 0 }
   0xc   :  { %18 = vsyncpa [#allocation6 + $0x1], 0 }
   0xd   :  { %19 = vsyncpa [#allocation12], 0 }
   0xe   :  { %21 = vsyncpa [#allocation12 + $0x1], 0  ;;  %s2138_s21 = smov 0   ;;  %s2140_s22 = smov 0  }
   0xf   :  { %s2142_s23 = smov 0   ;;  %s2144_s24 = smov 0  }
  0x10   :  { %s2146_s25 = smov 0   ;;  %s2148_s26 = smov 0  }
  0x11   :  { %s2150_s27 = smov 0   ;;  %s2152_s28 = smov 0  }
  0x12   :  { %s2154_s29 = smov 0   ;;  %s2156_s30 = smov 0  }
  0x13   :  { %s2158_s7 = smov 0  }
  0x14 LB: > { %2615 = sst [smem:[#allocation17_spill]] %s2036_s21  ;;  %s1423_s8 = sadd.s32 4294967295, %s2076_s7   ;;  %s2076_s7 = sphi %s2158_s7, %s27_s7   ;;  %s2072_s30 = sphi %s2156_s30, %s2656_s30   ;;  %s2068_s29 = sphi %s2154_s29, %s2648_s29   ;;  %s2064_s28 = sphi %s2152_s28, %s2655_s28   ;;  %s2060_s27 = sphi %s2150_s27, %s2647_s27   ;;  %s2056_s26 = sphi %s2148_s26, %s2654_s26   ;;  %s2052_s25 = sphi %s2146_s25, %s2653_s25   ;;  %s2048_s24 = sphi %s2144_s24, %s2652_s24   ;;  %s2044_s23 = sphi %s2142_s23, %s2651_s23   ;;  %s2040_s22 = sphi %s2140_s22, %s2650_s22   ;;  %s2036_s21 = sphi %s2138_s21, %s2649_s21  }
  0x15   : > { %2616 = sst [smem:[#allocation18_spill]] %s2068_s29  ;;  %s1424_s9 = sadd.s32 4294967294, %s2076_s7  }
  0x16   : > { %p59_p0 = scmp.ne.s32.totalorder %s2052_s25, %s2048_s24  ;;  %p2194_p1 = scmp.eq.s32.totalorder %s1423_s8, 0 }
  0x17   : > { %p168_p2 = scmp.ne.s32.totalorder %s2044_s23, %s2040_s22  ;;  %p169_p4 = scmp.eq.s32.totalorder %s1423_s8, 3 }
  0x18   : > { %s2617_s10 = scalar_select %p2194_p1, 1, 0 }
  0x19   : > { %p2203_p3 = por %p2194_p1, %p59_p0  ;;  %p174_p5 = scmp.ne.s32.totalorder %s2040_s22, %s2036_s21 }
  0x1a   : > { %p175_p6 = scmp.eq.s32.totalorder %s1424_s9, 3  ;;  %p2209_p7 = por %p169_p4, %p168_p2 }
  0x1b   : > { %s2618_s12 = scalar_select %p2203_p3, 1, 0 }
  0x1c   : > { %s2619_s13 = scalar_select %p2209_p7, 1, 0 }
  0x1d   : > { %p1425_p8 = scmp.ge.s32.totalorder %s2076_s7, 1  ;;  %p2214_p9 = por %p175_p6, %p174_p5 }
  0x1e   : > { %p210_p10 = scmp.lt.s32.totalorder %s2076_s7, 5  ;;  %s2078_s16 = smov [#allocation7]  }
  0x1f   : > { %s2620_s14 = scalar_select %p2214_p9, 1, 0 }
  0x20   : > { %p2219_p11 = pnand %p1425_p8, %p210_p10  ;;  %s222_s17 = sshll.u32 %s2078_s16, 4  ;;  %s223_s17 = int_to_ptr.vmem [resolvable:$true] %s222_s17 }
  0x21   : > { %2621 = sst [smem:[#allocation19_spill]] %s2620_s14  ;;  %s2079_s19 = smov [#allocation9]  }
  0x22   : > { %s2622_s15 = scalar_select %p2219_p11, 1, 0 }
  0x23   : > { %p1642_p12 = pneg %p2219_p11  ;;  %s238_s20 = sshll.u32 %s2079_s19, 4  ;;  %s2231_s20 = int_to_ptr.vmem [resolvable:$true] %s238_s20 }
  0x24   : > { %s2624_s1 = sld [smem:[#allocation22_spill]] }
  0x25   : > { %p2227_p13 = pnand %p1642_p12, %p2194_p1 }
  0x27   : > { %p1834_p2 = pneg %p2227_p13 }
  0x2a   : > { %s1832_s9 = scalar_lea.hbm %s2624_s1, 512 }
  0x2b   : > { %p1833_p0 = scmp.ne.s32.totalorder %s2624_s1, %s1832_s9  ;;  %p1839_p6 = scmp.lt.u32.totalorder %s1832_s9, %s2624_s1 }
  0x2d   : > { %p1835_p4 = pnand %p1834_p2, %p1833_p0 }
  0x2f   : > { %p1836_p5 = pneg %p1835_p4 }
  0x31   : > { %p1841_p8 = pnand %p1839_p6, %p1836_p5 }
  0x33   : > { %1844 = shalt.err (!%p1841_p8)
}
  0x34   : > { %s1845_s19 = scalar_lea.vmem %s223_s17, 512  ;;  %p1853_p7 = scmp.lt.s32.totalorder %s223_s17, %s223_s17 }
  0x35   : > { %p1846_p10 = scmp.ne.s32.totalorder %s223_s17, %s1845_s19  ;;  %p1854_p1 = scmp.lt.s32.totalorder %s1845_s19, %s1845_s19 }
  0x37   : > { %p1848_p12 = pnand %p1846_p10, %p1834_p2  ;;  %p1855_p3 = por %p1854_p1, %p1853_p7 }
  0x39   : > { %p1849_p9 = pneg %p1848_p12 }
  0x3b   : > { %p1856_p11 = pnand %p1855_p3, %p1849_p9 }
  0x3d   : > { %1859 = shalt.err (!%p1856_p11)
}
  0x3e   : > { %s2603_s11 = smov 128   ;;  %s2604_s24 = smov 8  }
  0x3f   : > { %1645 = dma.hbm_to_vmem [thread:$0]  (!%p2227_p13), %s2624_s1, 512, %s223_s17, [#allocation8], %s2603_s11, %s2603_s11, %s2604_s24  }
  0x40   : > { %s2625_s3 = sld [smem:[#allocation24_spill]] }
  0x46   : > { %s1860_s16 = scalar_lea.hbm %s2625_s3, 512 }
  0x47   : > { %p1861_p1 = scmp.ne.s32.totalorder %s2625_s3, %s1860_s16  ;;  %p1867_p9 = scmp.lt.u32.totalorder %s1860_s16, %s2625_s3 }
  0x49   : > { %p1863_p3 = pnand %p1861_p1, %p1834_p2 }
  0x4b   : > { %p1864_p7 = pneg %p1863_p3 }
  0x4d   : > { %p1869_p11 = pnand %p1867_p9, %p1864_p7 }
  0x4f   : > { %1872 = shalt.err (!%p1869_p11)
}
  0x50   : > { %s1873_s17 = scalar_lea.vmem %s2231_s20, 512  ;;  %p1881_p6 = scmp.lt.s32.totalorder %s2231_s20, %s2231_s20 }
  0x51   : > { %p1874_p0 = scmp.ne.s32.totalorder %s2231_s20, %s1873_s17  ;;  %p1882_p8 = scmp.lt.s32.totalorder %s1873_s17, %s1873_s17 }
  0x53   : > { %p1876_p4 = pnand %p1874_p0, %p1834_p2  ;;  %p1883_p10 = por %p1882_p8, %p1881_p6 }
  0x55   : > { %p1877_p5 = pneg %p1876_p4 }
  0x57   : > { %p1884_p12 = pnand %p1883_p10, %p1877_p5 }
  0x59   : > { %1887 = shalt.err (!%p1884_p12)
}
  0x5a   : > { %1648 = dma.hbm_to_vmem [thread:$0]  (!%p2227_p13), %s2625_s3, 512, %s2231_s20, [#allocation8], %s2603_s11, %s2603_s11, %s2604_s24  }
  0x5b   : > { %s36_s6 = sadd.s32 1, %s2068_s29  ;;  %s39_s18 = sadd.s32 1, %s2072_s30 }
  0x5c   : > { %p37_p2 = scmp.ge.s32.totalorder %s36_s6, 2  ;;  %s46_s21 = sadd.s32 1, %s2056_s26 }
  0x5d   : > { %p53_p1 = scmp.ne.s32.totalorder %s2056_s26, %s2052_s25  ;;  %p54_p3 = scmp.eq.s32.totalorder %s2076_s7, 0 }
  0x5e   : > { %s2658_s6 = smov (%p37_p2, %s36_s6), 0  ;;  %s2660_s18 = smov (!%p37_p2, %s39_s18), %s2072_s30 }
  0x5f   : > { %2626 = sst [smem:[#allocation20_spill]] %s2658_s6  ;;  %p2295_p7 = por %p54_p3, %p53_p1 }
  0x60   : > { %s154_s8 = ssub.s32 %s2068_s29, %s2658_s6  ;;  %p41_p13 = scmp.ge.s32.totalorder %s2660_s18, 2 }
  0x61   : > { %p1662_p9 = scmp.lt.s32.totalorder %s2076_s7, 4  ;;  %s255_s20 = sand.u32 1, %s2056_s26  }
  0x62   : > { %s1472_s9 = sshll.u32 %s2072_s30, 8  ;;  %s2662_s18 = smov (%p41_p13, %s2660_s18), 0 }
  0x63   : > { %s1429_s16 = sshll.u32 %s255_s20, 4  ;;  %s43_s19 = ssub.s32 %s2072_s30, %s2662_s18 }
  0x64   : > { %p44_p11 = scmp.eq.s32.totalorder %s43_s19, 0  ;;  %s155_s17 = sor.u32 %s154_s8, %s43_s19 }
  0x65   : > { %p156_p0 = scmp.eq.s32.totalorder %s155_s17, 0  ;;  %s2628_s0 = sld [smem:[#allocation21_spill]] }
  0x66   : > { %s2314_s24 = scalar_select %p44_p11, %s2056_s26, %s46_s21  }
  0x67   : > { %s2629_s1 = sadd.s32 1, %s2044_s23  ;;  %s259_s6 = scalar_lea.vmem [#allocation4], %s1429_s16 }
  0x68   : > { %s2319_s3 = scalar_select %p156_p0, %s2044_s23, %s2629_s1  }
  0x69   : > { %s266_s29 = sshll.u32 %s259_s6, 4  ;;  %p2325_p4 = pnand %p1662_p9, %p2295_p7  ;;  %s2329_s29 = int_to_ptr.vmem [resolvable:$true] %s266_s29 }
  0x6b   : > { %s2311_s11 = scalar_lea.hbm %s2628_s0, %s1472_s9  ;;  %s2331_s9 = scalar_lea.sflag [#allocation5], %s255_s20 }
  0x6c   : > { %s1888_s21 = scalar_lea.hbm %s2311_s11, 256  ;;  %p1890_p6 = pneg %p2325_p4 }
  0x6d   : > { %p1889_p5 = scmp.ne.s32.totalorder %s2311_s11, %s1888_s21  ;;  %s1893_s14 = scalar_lea.hbm %s2628_s0, 512 }
  0x6e   : > { %p1894_p12 = scmp.lt.u32.totalorder %s2311_s11, %s2628_s0  ;;  %p1895_p2 = scmp.lt.u32.totalorder %s1893_s14, %s1888_s21 }
  0x6f   : > { %p1891_p8 = pnand %p1890_p6, %p1889_p5  ;;  %p1897_p3 = scmp.lt.u32.totalorder %s1888_s21, %s2311_s11 }
  0x70   : > { %p1896_p1 = por %p1895_p2, %p1894_p12 }
  0x71   : > { %p1892_p10 = pneg %p1891_p8 }
  0x72   : > { %p1898_p7 = por %p1897_p3, %p1896_p1 }
  0x74   : > { %p1899_p13 = pnand %p1898_p7, %p1892_p10 }
  0x76   : > { %1902 = shalt.err (!%p1899_p13)
}
  0x77   : > { %s1903_s20 = scalar_lea.vmem %s2329_s29, 256  ;;  %s2082_s17 = smov [#allocation4]  }
  0x78   : > { %p1904_p9 = scmp.ne.s32.totalorder %s2329_s29, %s1903_s20  ;;  %s1908_s4 = sshll.u32 %s2082_s17, 4  ;;  %s1909_s4 = int_to_ptr.vmem [resolvable:$false] %s1908_s4 }
  0x79   : > { %s1910_s5 = scalar_lea.vmem %s1909_s4, 512  ;;  %p1911_p5 = scmp.lt.s32.totalorder %s2329_s29, %s1909_s4 }
  0x7a   : > { %p1906_p11 = pnand %p1904_p9, %p1890_p6  ;;  %p1912_p8 = scmp.lt.s32.totalorder %s1910_s5, %s1903_s20 }
  0x7c   : > { %p1907_p0 = pneg %p1906_p11  ;;  %p1913_p12 = por %p1912_p8, %p1911_p5 }
  0x7e   : > { %p1914_p2 = pnand %p1913_p12, %p1907_p0 }
  0x80   : > { %1917 = shalt.err (!%p1914_p2)
}
  0x81   : > { %s2631_s21 = smov 8   ;;  %s2632_s1 = smov 128  }
  0x82   : > { %1652 = dma.hbm_to_vmem [thread:$0]  (!%p2325_p4), %s2311_s11, 256, %s2329_s29, %s2331_s9, %s2632_s1, %s2632_s1, %s2631_s21  }
  0x83   : > { %p2633_p6 = scmp.ne.s32.totalorder %s2622_s15, 0 }
  0x84   : > { %s280_s6 = sand.u32 (!%p2633_p6), 1, %s2052_s25   ;;  %p2634_p10 = scmp.ne.s32.totalorder (!%p2633_p6), %s2618_s12, 0 }
  0x85   : > { %278 = sbr.rel (%p2633_p6) target bundleno = 2836 (0xb14), region = 40  ;;  %s1433_s14 = sshll.u32 (!%p2633_p6), %s280_s6, 4 }
  0x86   : > { %s281_s16 = scalar_lea.sflag (!%p2633_p6), [#allocation5], %s280_s6  ;;  %s284_s19 = scalar_lea.vmem (!%p2633_p6), [#allocation4], %s1433_s14 }
  0x8c   : > { %2019 = dma.done.wait (%p2634_p10), %s281_s16, 256  }
  0x8d   : > { %2021 = vsyncadd (%p2634_p10), %s281_s16, 4294967040  ;;  %p2635_p1 = scmp.ne.s32.totalorder %s2617_s10, 0 }
  0x8f   : > { %2023 = dma.done.wait (%p2635_p1), [#allocation8], 1024  }
  0x90   : > { %2025 = vsyncadd (%p2635_p1), [#allocation8], 4294966272  ;;  %s2374_s29 = sand.u32 1, %s2040_s22   ;;  %p1438_p4 = scmp.ne.s32.totalorder %s2060_s27, 0 }
  0x91   : > { %s1436_s15 = sshll.u32 %s2374_s29, 3  ;;  %s1437_s11 = sshll.u32 %s2374_s29, 5  ;;  %v332_v0 = vld [vmem:[#allocation7] sm:$0xff] (!%p1438_p4)  ;;  %v333_v1 = vld [vmem:[#allocation7 + $0x8] sm:$0xff] (!%p1438_p4)  ;;  %v334_v2 = vld [vmem:[#allocation7 + $0x10] sm:$0xff] (!%p1438_p4)  ;;  %vm343_vm0 = vcmask (!%p1438_p4), 261120  }
  0x92   : > { %s2378_s8 = scalar_lea.vmem [#allocation10], %s1436_s15  ;;  %s2380_s9 = scalar_lea.vmem [#allocation11], %s1437_s11  ;;  %v1586_v3 = vpack.c.bf16 (!%p1438_p4), %v333_v1, %v332_v0  ;;  %v335_v4 = vld [vmem:[#allocation7 + $0x18] sm:$0xff] (!%p1438_p4)  ;;  %v330_v5 = vld [vmem:[%s284_s19] sm:$0xff] (!%p1438_p4)  ;;  %vm425_vm1 = vcmask (!%p1438_p4), 785408  }
  0x93   : > { %329 = sbr.rel (%p1438_p4) target bundleno = 372 (0x174), region = 56  ;;  %v1590_v6 = vpack.c.bf16 (!%p1438_p4), %v335_v4, %v334_v2  ;;  %1516 = vmatprep.mubr.msk.f32.mxu0 (!%p1438_p4), %vm343_vm0, %v330_v5  ;;  %v331_v7 = vld [vmem:[%s284_s19 + $0x8] sm:$0xff] (!%p1438_p4)  ;;  %s2636_s2 = sld [smem:[#allocation23_spill]] (!%p1438_p4) }
  0x94   : > { %1587 = vmatprep.subr.bf16.mxu0 (!%p1438_p4), %v1586_v3 }
  0x95   : > { %1589 = vmatpush3.bf16.msra.mxu0 (!%p1438_p4), %v1586_v3 }
  0x96   : > { %1591 = vmatprep.subr.bf16.mxu0 (!%p1438_p4), %v1590_v6 }
  0x99   : > { %1593 = vmatpush3.bf16.msra.mxu0 (!%p1438_p4), %v1590_v6  ;;  %v1439_v8 = vld [vmem:[%s2636_s2] ss:$0 sm:$0xff] (!%p1438_p4) }
  0x9c   : > { %1517 = vmatmul.mubr.msk.f32.vlgmr.msra.gmra.mrb[0].mxu0 %vm343_vm0, %v331_v7 }
 0x16f   : > { %v1518_v9 = vpop.f32.mrb[0].mxu0 }
 0x170   : > { %v422_v10 = vadd.f32 %v1518_v9, %v1439_v8  ;;  %v416_v11 = vpop.f32.mrb[1].mxu0 }
 0x171   : > { %v417_v12 = vadd.f32 %v1439_v8, %v416_v11 }
 0x172   : > { %427 = vst.msk [vmem:[#allocation2 + $0x8] sm:$0xff] %vm425_vm1, %v422_v10 }
 0x173   : > { %426 = vst.msk [vmem:[#allocation2] sm:$0xff] %vm425_vm1, %v417_v12 }
 0x174 PF: > { %v2083_v16 = vmov 0.0|0.0   ;;  %vm2084_vm2 = vmmov 0   ;;  %v2085_v17 = vmov 0.0   ;;  %s2086_s20 = smov 96   ;;  %vm439_vm3 = vcmask 64512   ;;  %s1442_s17 = sshll.u32 %s2060_s27, 3 }
 0x175   : > { %1594 = vmatprep.subr.bf16.mxu0 %v2083_v16  ;;  %1598 = vmatprep.subr.bf16.mxu1 %v2083_v16  ;;  %vm2397_vm4 = vmpackc.low %vm439_vm3, %vm439_vm3  ;;  %s429_s4 = scalar_lea.vmem [#allocation2], %s1442_s17  ;;  %s2087_s5 = smov 64   ;;  %vm517_vm5 = vcmask 130048   ;;  %vm1158_vm6 = vcmask 261248   ;;  %vm1172_vm7 = vcmask 261120  }
 0x176   : > { %1523 = vmatprep.mubr.msk.f32.mxu0 %vm2084_vm2, %v2085_v17  ;;  %1530 = vmatprep.mubr.msk.f32.mxu1 %vm2084_vm2, %v2085_v17  ;;  %s2088_s21 = smov 88   ;;  %s2089_s1 = smov 120  }
 0x177   : > { %s2090_s6 = smov 80   ;;  %s2091_s14 = smov 112  }
 0x178   : > { %s2092_s16 = smov 104   ;;  %s2093_s19 = smov 56  }
 0x179   : > { %v432_v14 = vld [vmem:[#allocation2 + $0x8] sm:$0xff]  ;;  %s2094_s15 = smov 48   ;;  %s2095_s11 = smov 72  }
 0x17a   : > { %v431_v13 = vld [vmem:[#allocation2] sm:$0xff]  ;;  %s2096_s10 = smov 40   ;;  %s2097_s12 = smov 8  }
 0x17b   : > { %v2386_v15 = vpack.i.bf16 %v432_v14, %v431_v13  ;;  %v2405_v23 = vld [vmem:[%s429_s4] sm:$0xff]  ;;  %s1468_s17 = sshll.u32 %s2064_s28, 3  ;;  %p2640_p7 = scmp.ne.s32.totalorder %s2619_s13, 0 }
 0x17c   : > { %s1279_s4 = sadd.s32 %s2060_s27, %s1468_s17 }
 0x17d   : > { %1777 = vrot.lane.b32.xlu0 %v2386_v15, %s2086_s20  ;;  %1782 = vrot.lane.b32.xlu1 %v2386_v15, %s2087_s5  ;;  %s2098_s20 = smov 16   ;;  %s1469_s5 = sshll.u32 %s1279_s4, 7 }
 0x181   : > { %1787 = vrot.lane.b32.xlu1 %v2386_v15, %s2088_s21  ;;  %s1282_s21 = sshll.u32 %s2380_s9, 4  ;;  %s2486_s21 = int_to_ptr.vmem [resolvable:$true] %s1282_s21 }
 0x185   : > { %611 = vrot.lane.b32.xlu1 %v2405_v23, %s2089_s1 }
 0x1ef   : > { %v1778_v18 = vpop.permute.xlu0 %1777  ;;  %v1783_v27 = vpop.permute.xlu1 %1782 }
 0x1f0   : > { %v1780_v19 = vunpack.i.h.bf16 %v1778_v18  ;;  %v1779_v20 = vunpack.i.l.bf16 %v1778_v18  ;;  %v1785_v28 = vunpack.i.h.bf16 %v1783_v27  ;;  %v1784_v29 = vunpack.i.l.bf16 %v1783_v27 }
 0x1f2   : > { %v1595_v22 = vpack.c.bf16 %v1780_v19, %v1779_v20  ;;  %v1599_v30 = vpack.c.bf16 %v1785_v28, %v1784_v29 }
 0x1f3   : > { %v1788_v36 = vpop.permute.xlu1 %1787 }
 0x1f4   : > { %1597 = vmatpush3.bf16.xpose.msk.msra.mxu0 %vm2397_vm4, %v1595_v22  ;;  %1600 = vmatpush3.bf16.msra.mxu1 %v1599_v30  ;;  %v1790_v43 = vunpack.i.h.bf16 %v1788_v36  ;;  %v1789_v44 = vunpack.i.l.bf16 %v1788_v36 }
 0x1f5   : > { %1608 = vmatprep.subr.bf16.mxu0 %v2083_v16  ;;  %1601 = vmatprep.subr.bf16.mxu1 %v2083_v16 }
 0x1f6   : > { %v1602_v47 = vpack.c.bf16 %v1790_v43, %v1789_v44 }
 0x1f7   : > { %v612_v37 = vpop.permute.xlu1 %611 }
 0x1fb   : > { %1524 = vmatmul.mubr.msk.f32.vlgmr.msra.gmra.mrb[0].mxu0 %vm439_vm3, %v2405_v23 }
 0x1fc   : > { %1551 = vmatprep.mubr.msk.f32.mxu0 %vm2084_vm2, %v2085_v17 }
 0x2ce   : > { %v513_v24 = vpop.f32.mrb[0].mxu0 }
 0x2cf   : > { %v1525_v25 = vpop.f32.mrb[1].mxu0  ;;  %v518_v26 = vsel %vm517_vm5, %v513_v24, -inf }
 0x2d0   : > { %519 = vmax.xlane.f32.xlu0 %v518_v26 }
 0x35d   : > { %v520_v31 = vpop.xlane.xlu0 %519 }
 0x35e   : > { %v521_v32 = vsub.f32 %v513_v24, %v520_v31 }
 0x360   : > { %v522_v33 = vmul.f32 1.442695, %v521_v32 }
 0x362   : > { %1816 = vpow2.f32 %v522_v33 }
 0x36c   : > { %v1817_v34 = vpop.eup %1816 }
 0x36d   : > { %v524_v35 = vsel %vm517_vm5, %v1817_v34, 0.0 }
 0x36e   : > { %525 = vadd.xlane.f32.xlu1 %v524_v35 }
 0x37f   : > { %1792 = vrot.lane.b32.xlu1 %v2386_v15, %s2090_s6 }
 0x383   : > { %795 = vrot.lane.b32.xlu1 %v2405_v23, %s2091_s14  ;;  %s2639_s14 = sld [smem:[#allocation27_spill]] }
 0x3fb   : > { %v526_v38 = vpop.xlane.xlu1 %525 }
 0x3fc   : > { %1818 = vrcp.f32 %v526_v38 }
 0x3ff   : > { %v1793_v39 = vpop.permute.xlu1 %1792 }
 0x400   : > { %v1795_v40 = vunpack.i.h.bf16 %v1793_v39  ;;  %v1794_v41 = vunpack.i.l.bf16 %v1793_v39 }
 0x402   : > { %v1609_v42 = vpack.c.bf16 %v1795_v40, %v1794_v41 }
 0x403   : > { %v796_v48 = vpop.permute.xlu1 %795 }
 0x404   : > { %1611 = vmatpush3.bf16.xpose.msk.msra.mxu0 %vm2397_vm4, %v1609_v42 }
 0x405   : > { %1619 = vmatprep.subr.bf16.mxu0 %v2083_v16 }
 0x406   : > { %v1819_v45 = vpop.eup %1818 }
 0x407   : > { %v528_v46 = vmul.f32 %v1819_v45, %v1817_v34 }
 0x409   : > { %529 = vst.msk [vmem:[%s2380_s9] sm:$0xff] %vm517_vm5, %v528_v46  ;;  %1531 = vmatmul.mubr.msk.f32.vlgmr.msra.gmra.mrb[0].mxu1 %vm517_vm5, %v528_v46 }
 0x40a   : > { %1604 = vmatpush3.bf16.xpose.msk.msra.mxu1 %vm2397_vm4, %v1602_v47  ;;  %1537 = vmatprep.mubr.msk.f32.mxu1 %vm2084_vm2, %v2085_v17  ;;  %v1161_v47 = vld [vmem:[#allocation9] sm:$0xff] }
 0x40b   : > { %1552 = vmatmul.mubr.msk.f32.vlgmr.msra.gmra.mrb[2].mxu0 %vm439_vm3, %v796_v48  ;;  %1605 = vmatprep.subr.bf16.mxu1 %v2083_v16  ;;  %v1162_v48 = vld [vmem:[#allocation9 + $0x8] sm:$0xff] }
 0x40c   : > { %1572 = vmatprep.mubr.msk.f32.mxu0 %vm2084_vm2, %v2085_v17 }
 0x411   : > { %1538 = vmatmul.mubr.msk.f32.vlgmr.msra.gmra.mrb[2].mxu1 %vm439_vm3, %v612_v37 }
 0x412   : > { %1544 = vmatprep.mubr.msk.f32.mxu1 %vm2084_vm2, %v2085_v17 }
 0x4dc   : > { %v2436_v49 = vpop.f32.mrb[0].mxu1 }
 0x4dd   : > { %v1532_v50 = vpop.f32.mrb[1].mxu1 }
 0x4de   : > { %v875_v51 = vpop.f32.mrb[2].mxu0  ;;  %v1163_v50 = vld [vmem:[#allocation9 + $0x10] sm:$0xff] }
 0x4df   : > { %v1553_v52 = vpop.f32.mrb[3].mxu0  ;;  %v879_v53 = vsel %vm517_vm5, %v875_v51, -inf }
 0x4e0   : > { %880 = vmax.xlane.f32.xlu1 %v879_v53 }
 0x4e4   : > { %v691_v54 = vpop.f32.mrb[2].mxu1 }
 0x4e5   : > { %v1539_v55 = vpop.f32.mrb[3].mxu1  ;;  %v695_v56 = vsel %vm517_vm5, %v691_v54, -inf }
 0x4e6   : > { %696 = vmax.xlane.f32.xlu0 %v695_v56 }
 0x4f1   : > { %973 = vrot.lane.b32.xlu1 %v2405_v23, %s2092_s16  ;;  %s2484_s16 = scalar_lea.hbm %s2639_s14, %s1469_s5 }
 0x56d   : > { %v881_v57 = vpop.xlane.xlu1 %880 }
 0x56e   : > { %v882_v58 = vsub.f32 %v875_v51, %v881_v57  ;;  %v1164_v51 = vld [vmem:[#allocation9 + $0x18] sm:$0xff] }
 0x56f   : > { %v1626_v52 = vpack.c.bf16 %v1164_v51, %v1163_v50 }
 0x570   : > { %v883_v59 = vmul.f32 1.442695, %v882_v58 }
 0x571   : > { %v974_v25 = vpop.permute.xlu1 %973 }
 0x572   : > { %1820 = vpow2.f32 %v883_v59 }
 0x573   : > { %v697_v62 = vpop.xlane.xlu0 %696 }
 0x574   : > { %v698_v63 = vsub.f32 %v691_v54, %v697_v62 }
 0x576   : > { %v699_v0 = vmul.f32 1.442695, %v698_v63 }
 0x578   : > { %1822 = vpow2.f32 %v699_v0 }
 0x57c   : > { %v1821_v60 = vpop.eup %1820 }
 0x57d   : > { %v885_v61 = vsel %vm517_vm5, %v1821_v60, 0.0 }
 0x57e   : > { %886 = vadd.xlane.f32.xlu0 %v885_v61 }
 0x582   : > { %v1823_v1 = vpop.eup %1822 }
 0x583   : > { %v701_v2 = vsel %vm517_vm5, %v1823_v1, 0.0 }
 0x594   : > { %1797 = vrot.lane.b32.xlu0 %v2386_v15, %s2093_s19  ;;  %s1253_s19 = scalar_lea.sflag [#allocation12], %s2374_s29 }
 0x5b3   : > { %702 = vadd.xlane.f32.xlu0 %v701_v2 }
 0x5c9   : > { %1802 = vrot.lane.b32.xlu0 %v2386_v15, %s2094_s15  ;;  %s1918_s15 = scalar_lea.vmem %s2486_s21, 512 }
 0x5ca   : > { %p1919_p3 = scmp.ne.s32.totalorder %s2486_s21, %s1918_s15 }
 0x5cc   : > { %p1920_p13 = pnand %p1919_p3, %p2640_p7 }
 0x5cd   : > { %1807 = vrot.lane.b32.xlu0 %v2386_v15, %s2095_s11  ;;  %s2099_s11 = smov [#allocation11]  }
 0x5ce   : > { %p1921_p9 = pneg %p1920_p13 }
 0x60b   : > { %v887_v3 = vpop.xlane.xlu0 %886 }
 0x60c   : > { %1824 = vrcp.f32 %v887_v3 }
 0x60f   : > { %v1798_v4 = vpop.permute.xlu0 %1797 }
 0x610   : > { %v1800_v5 = vunpack.i.h.bf16 %v1798_v4  ;;  %v1799_v6 = vunpack.i.l.bf16 %v1798_v4 }
 0x612   : > { %v1606_v7 = vpack.c.bf16 %v1800_v5, %v1799_v6 }
 0x614   : > { %1607 = vmatpush3.bf16.msra.mxu1 %v1606_v7 }
 0x615   : > { %1612 = vmatprep.subr.bf16.mxu1 %v2083_v16 }
 0x616   : > { %v1825_v8 = vpop.eup %1824 }
 0x617   : > { %v889_v9 = vmul.f32 %v1825_v8, %v1821_v60 }
 0x619   : > { %1455 = vst.msk [vmem:[%s2380_s9 + $0x10] sm:$0xff] %vm517_vm5, %v889_v9 }
 0x640   : > { %v703_v10 = vpop.xlane.xlu0 %702 }
 0x641   : > { %1826 = vrcp.f32 %v703_v10 }
 0x644   : > { %v1803_v11 = vpop.permute.xlu0 %1802 }
 0x645   : > { %v1805_v12 = vunpack.i.h.bf16 %v1803_v11  ;;  %v1804_v13 = vunpack.i.l.bf16 %v1803_v11 }
 0x647   : > { %v1613_v18 = vpack.c.bf16 %v1805_v12, %v1804_v13 }
 0x648   : > { %v1808_v20 = vpop.permute.xlu0 %1807 }
 0x649   : > { %v1810_v22 = vunpack.i.h.bf16 %v1808_v20  ;;  %v1809_v23 = vunpack.i.l.bf16 %v1808_v20 }
 0x64b   : > { %v1827_v14 = vpop.eup %1826  ;;  %v1616_v24 = vpack.c.bf16 %v1810_v22, %v1809_v23 }
 0x64c   : > { %v705_v19 = vmul.f32 %v1827_v14, %v1823_v1 }
 0x64e   : > { %1450 = vst.msk [vmem:[%s2380_s9 + $0x8] sm:$0xff] %vm517_vm5, %v705_v19  ;;  %1545 = vmatmul.mubr.msk.f32.vlgmr.msra.gmra.mrb[4].mxu1 %vm517_vm5, %v705_v19 }
 0x64f   : > { %1614 = vmatpush3.bf16.msra.mxu1 %v1613_v18  ;;  %1558 = vmatprep.mubr.msk.f32.mxu1 %vm2084_vm2, %v2085_v17 }
 0x650   : > { %1615 = vmatprep.subr.bf16.mxu1 %v2083_v16 }
 0x652   : > { %1559 = vmatmul.mubr.msk.f32.vlgmr.msra.gmra.mrb[6].mxu1 %vm517_vm5, %v889_v9 }
 0x653   : > { %1565 = vmatprep.mubr.msk.f32.mxu1 %vm2084_vm2, %v2085_v17 }
 0x658   : > { %1618 = vmatpush3.bf16.xpose.msk.msra.mxu1 %vm2397_vm4, %v1616_v24 }
 0x65f   : > { %1566 = vmatmul.mubr.msk.f32.vlgmr.msra.gmra.mrb[8].mxu1 %vm439_vm3, %v974_v25 }
 0x721   : > { %v783_v26 = vpop.f32.mrb[4].mxu1 }
 0x722   : > { %v1546_v27 = vpop.f32.mrb[5].mxu1 }
 0x725   : > { %v967_v28 = vpop.f32.mrb[6].mxu1 }
 0x726   : > { %v1560_v29 = vpop.f32.mrb[7].mxu1 }
 0x732   : > { %v1053_v30 = vpop.f32.mrb[8].mxu1 }
 0x733   : > { %v1567_v31 = vpop.f32.mrb[9].mxu1  ;;  %v1057_v32 = vsel %vm517_vm5, %v1053_v30, -inf }
 0x734   : > { %1058 = vmax.xlane.f32.xlu0 %v1057_v32 }
 0x74a   : > { %1812 = vrot.lane.b32.xlu0 %v2386_v15, %s2096_s10  ;;  %s1922_s10 = sshll.u32 %s2099_s11, 4  ;;  %s1923_s10 = int_to_ptr.vmem [resolvable:$false] %s1922_s10 }
 0x74b   : > { %p1925_p11 = scmp.lt.s32.totalorder %s2486_s21, %s1923_s10 }
 0x74e   : > { %788 = vrot.lane.b32.xlu0 %v783_v26, %s2097_s12 }
 0x7c1   : > { %v1059_v21 = vpop.xlane.xlu0 %1058 }
 0x7c2   : > { %v1060_v33 = vsub.f32 %v1053_v30, %v1059_v21 }
 0x7c4   : > { %v1061_v34 = vmul.f32 1.442695, %v1060_v33 }
 0x7c5   : > { %v1813_v35 = vpop.permute.xlu0 %1812 }
 0x7c6   : > { %1828 = vpow2.f32 %v1061_v34  ;;  %v1815_v36 = vunpack.i.h.bf16 %v1813_v35  ;;  %v1814_v37 = vunpack.i.l.bf16 %v1813_v35 }
 0x7c8   : > { %v1620_v38 = vpack.c.bf16 %v1815_v36, %v1814_v37 }
 0x7c9   : > { %v789_v39 = vpop.permute.xlu0 %788 }
 0x7ca   : > { %v791_v40 = vsel %vm439_vm3, %v2436_v49, %v789_v39  ;;  %1621 = vmatpush3.bf16.msra.mxu0 %v1620_v38  ;;  %v1623_v49 = vpack.c.bf16 %v1162_v48, %v1161_v47 }
 0x7cb   : > { %792 = vst.msk [vmem:[#allocation3] sm:$0xff] %vm517_vm5, %v791_v40  ;;  %1622 = vmatprep.subr.bf16.mxu0 %v2083_v16 }
 0x7d0   : > { %v1829_v15 = vpop.eup %1828 }
 0x7d1   : > { %v1063_v41 = vsel %vm517_vm5, %v1829_v15, 0.0 }
 0x7d2   : > { %1064 = vadd.xlane.f32.xlu1 %v1063_v41 }
 0x85f   : > { %v1065_v42 = vpop.xlane.xlu1 %1064 }
 0x860   : > { %1830 = vrcp.f32 %v1065_v42 }
 0x86a   : > { %v1831_v43 = vpop.eup %1830 }
 0x86b   : > { %v1067_v44 = vmul.f32 %v1831_v43, %v1829_v15 }
 0x86d   : > { %1460 = vst.msk [vmem:[%s2380_s9 + $0x18] sm:$0xff] %vm517_vm5, %v1067_v44  ;;  %1573 = vmatmul.mubr.msk.f32.vlgmr.msra.gmra.mrb[4].mxu0 %vm517_vm5, %v1067_v44  ;;  %s1924_s9 = scalar_lea.vmem %s1923_s10, 1024 }
 0x86e   : > { %1583 = vmatprep.mubr.msk.f32.mxu0 %vm2084_vm2, %v2085_v17  ;;  %1624 = vmatpush3.bf16.msra.mxu0 %v1623_v49  ;;  %p1926_p0 = scmp.lt.s32.totalorder %s1924_s9, %s1918_s15 }
 0x86f   : > { %1625 = vmatprep.subr.bf16.mxu0 %v2083_v16 }
 0x870   : > { %p1927_p5 = por %p1926_p0, %p1925_p11 }
 0x872   : > { %1627 = vmatpush3.bf16.msra.mxu0 %v1626_v52  ;;  %p1928_p8 = pnand %p1927_p5, %p1921_p9 }
 0x940   : > { %v1145_v45 = vpop.f32.mrb[4].mxu0 }
 0x941   : > { %1150 = vrot.lane.b32.xlu1 %v1145_v45, %s2097_s12  ;;  %v1574_v46 = vpop.f32.mrb[5].mxu0 }
 0x9b3   : > { %v1151_v53 = vpop.permute.xlu1 %1150 }
 0x9b4   : > { %v1153_v17 = vsel %vm439_vm3, %v967_v28, %v1151_v53 }
 0x9b5   : > { %1155 = vrot.lane.b32.xlu0 %v1153_v17, %s2098_s20 }
 0xa27   : > { %v1156_v54 = vpop.permute.xlu0 %1155 }
 0xa28   : > { %1159 = vst.msk [vmem:[#allocation3] sm:$0xff] %vm1158_vm6, %v1156_v54 }
 0xa2f   : > { %v1160_v55 = vld [vmem:[#allocation3] sm:$0xff] }
 0xa30   : > { %1584 = vmatmul.mubr.msk.f32.vlgmr.msra.gmra.mrb[6].mxu0 %vm1172_vm7, %v1160_v55 }
 0xa31   : > { %1931 = shalt.err (!%p1928_p8)
}
 0xa32   : > { %s1932_s20 = scalar_lea.hbm %s2484_s16, 512  ;;  %s1936_s5 = scalar_lea.hbm %s2639_s14, 2048 }
 0xa33   : > { %p1933_p12 = scmp.ne.s32.totalorder %s2484_s16, %s1932_s20  ;;  %p1937_p10 = scmp.lt.u32.totalorder %s2484_s16, %s2639_s14 }
 0xa34   : > { %p1938_p1 = scmp.lt.u32.totalorder %s1936_s5, %s1932_s20  ;;  %p1940_p3 = scmp.lt.u32.totalorder %s1932_s20, %s2484_s16 }
 0xa35   : > { %p1934_p2 = pnand %p1933_p12, %p2640_p7 }
 0xa36   : > { %p1939_p4 = por %p1938_p1, %p1937_p10 }
 0xa37   : > { %p1935_p6 = pneg %p1934_p2 }
 0xa38   : > { %p1941_p13 = por %p1940_p3, %p1939_p4 }
 0xa3a   : > { %p1942_p9 = pnand %p1941_p13, %p1935_p6 }
 0xa3c   : > { %1945 = shalt.err (!%p1942_p9)
}
 0xa3d   : > { %s2100_s15 = smov 128   ;;  %s2101_s11 = smov 256  }
 0xa3e   : > { %1639 = dma.vmem_to_hbm [thread:$0]  (%p2640_p7), %s2486_s21, 512, %s2484_s16, %s1253_s19, %s2100_s15, %s2101_s11, %s2097_s12  }
 0xa3f   : > { %s1466_s10 = sshll.u32 %s2064_s28, 1  ;;  %s2641_s4 = sld [smem:[#allocation25_spill]] }
 0xa40   : > { %s1264_s9 = sadd.s32 %s2060_s27, %s1466_s10  ;;  %s1268_s1 = sshll.u32 %s2378_s8, 4  ;;  %s2524_s1 = int_to_ptr.vmem [resolvable:$true] %s1268_s1 }
 0xa41   : > { %s1467_s5 = sshll.u32 %s1264_s9, 7  ;;  %s2642_s2 = sld [smem:[#allocation26_spill]] }
 0xa42   : > { %s1248_s27 = scalar_lea.sflag [#allocation6], %s2374_s29  ;;  %s1946_s28 = scalar_lea.vmem %s2524_s1, 128 }
 0xa43   : > { %p1947_p11 = scmp.ne.s32.totalorder %s2524_s1, %s1946_s28  ;;  %s2102_s12 = smov [#allocation10]  }
 0xa44   : > { %s1950_s21 = sshll.u32 %s2102_s12, 4  ;;  %s1951_s21 = int_to_ptr.vmem [resolvable:$false] %s1950_s21 }
 0xa45   : > { %v1462_v16 = vld [vmem:[%s2641_s4] ss:$0 sm:$0xff]  ;;  %p1948_p0 = pnand %p1947_p11, %p2640_p7  ;;  %s1952_s16 = scalar_lea.vmem %s1951_s21, 256 }
 0xa46   : > { %p1953_p8 = scmp.lt.s32.totalorder %s2524_s1, %s1951_s21  ;;  %p1954_p12 = scmp.lt.s32.totalorder %s1952_s16, %s1946_s28 }
 0xa47   : > { %s2522_s14 = scalar_lea.hbm %s2642_s2, %s1467_s5  ;;  %p1949_p5 = pneg %p1948_p0 }
 0xa48   : > { %p1955_p2 = por %p1954_p12, %p1953_p8 }
 0xa4a   : > { %p1956_p6 = pnand %p1955_p2, %p1949_p5 }
 0xb03   : > { %v1242_v56 = vpop.f32.mrb[6].mxu0 }
 0xb04   : > { %v1243_v57 = vadd.f32 %v1462_v16, %v1242_v56  ;;  %v1585_v58 = vpop.f32.mrb[7].mxu0 }
 0xb06   : > { %1246 = vst.msk [vmem:[%s2378_s8] sm:$0xff] %vm1172_vm7, %v1243_v57 }
 0xb07   : > { %1959 = shalt.err (!%p1956_p6)
}
 0xb08   : > { %s1960_s0 = scalar_lea.hbm %s2522_s14, 128  ;;  %s1964_s19 = scalar_lea.hbm %s2642_s2, 512 }
 0xb09   : > { %p1961_p10 = scmp.ne.s32.totalorder %s2522_s14, %s1960_s0  ;;  %p1965_p3 = scmp.lt.u32.totalorder %s2522_s14, %s2642_s2 }
 0xb0a   : > { %p1966_p13 = scmp.lt.u32.totalorder %s1964_s19, %s1960_s0  ;;  %p1968_p11 = scmp.lt.u32.totalorder %s1960_s0, %s2522_s14 }
 0xb0b   : > { %p1962_p1 = pnand %p1961_p10, %p2640_p7 }
 0xb0c   : > { %p1967_p9 = por %p1966_p13, %p1965_p3 }
 0xb0d   : > { %p1963_p4 = pneg %p1962_p1 }
 0xb0e   : > { %p1969_p0 = por %p1968_p11, %p1967_p9 }
 0xb10   : > { %p1970_p5 = pnand %p1969_p0, %p1963_p4 }
 0xb12   : > { %1973 = shalt.err (!%p1970_p5)
}
 0xb13   : > { %1638 = dma.vmem_to_hbm [thread:$0]  (%p2640_p7), %s2524_s1, 128, %s2522_s14, %s1248_s27  }
 0xb14 PF: > { %s2643_s10 = sld [smem:[#allocation17_spill]]  ;;  %s2644_s9 = sld [smem:[#allocation19_spill]] }
 0xb15   : > { %p1665_p8 = scmp.ge.s32.totalorder %s2076_s7, 2 }
 0xb1a   : > { %s1297_s20 = sand.u32 1, %s2643_s10   ;;  %p2645_p12 = scmp.ne.s32.totalorder %s2644_s9, 0 }
 0xb1b   : > { %s1298_s17 = scalar_lea.sflag [#allocation6], %s1297_s20 }
 0xb1c   : > { %p1654_p2 = pnand %p1665_p8, %p2645_p12 }
 0xb1e   : > { %2027 = dma.done.wait (!%p1654_p2), %s1298_s17, 128  }
 0xb1f   : > { %2029 = vsyncadd (!%p1654_p2), %s1298_s17, 4294967168  ;;  %s1307_s4 = scalar_lea.sflag [#allocation12], %s1297_s20 }
 0xb20   : > { %2031 = dma.done.wait (!%p1654_p2), %s1307_s4, 512  }
 0xb21   : > { %2033 = vsyncadd (!%p1654_p2), %s1307_s4, 4294966784  ;;  %s27_s7 = sadd.s32 1, %s2076_s7   ;;  %s2646_s13 = smov %s2314_s24 }
 0xb22   : > { %p24_p6 = scmp.ge.s32.totalorder %s27_s7, 6   ;;  %s2647_s27 = sld [smem:[#allocation18_spill]] }
 0xb23   : > { %s2648_s29 = sld [smem:[#allocation20_spill]]  ;;  %s2649_s21 = smov %s2040_s22 }
 0xb24   : > { %s2650_s22 = smov %s2044_s23  ;;  %s2651_s23 = smov %s2319_s3 }
 0xb25   : > { %s2652_s24 = smov %s2052_s25  ;;  %s2653_s25 = smov %s2056_s26 }
 0xb26   : > { %s2654_s26 = smov %s2646_s13  ;;  %s2655_s28 = smov %s2072_s30 }
 0xb27   : > { %s2656_s30 = smov %s2662_s18  ;;  %26 = sbr.rel (!%p24_p6) target bundleno = 20 (0x14), region = 118 }
 0xb2e   :  { %1312 = vsyncpa [#allocation5], 1 }
 0xb2f   :  { %1314 = vsyncpa [#allocation5 + $0x1], 1 }
 0xb30   :  { %1315 = vsyncpa [#allocation8], 1 }
 0xb31   :  { %1316 = vsyncpa [#allocation6], 1 }
 0xb32   :  { %1318 = vsyncpa [#allocation6 + $0x1], 1 }
 0xb33   :  { %1319 = vsyncpa [#allocation12], 1 }
 0xb34   :  { %1321 = vsyncpa [#allocation12 + $0x1], 1 }

</bundles_post_ra>
